<compile_context>
chip_gen: v7x
topology: tpu7x:2x2x1
jax: 0.10.0
libtpu: 0.0.40
codegen_flags: <defaults>
</compile_context>

<pallas_src>
import numpy as np
import jax
import jax.numpy as jnp
from jax.experimental import pallas as pl
from jax.experimental.pallas import tpu as pltpu

BOARD = 6                 # board_size (Triple Town board is 6x6)
BATCH = 2
HP = BOARD + 2            # zero-padded spatial extent = 8
NP = HP * HP              # padded positions per channel = 64
FEAT = BOARD ** 3         # 216 conv features fed to fc1
HID = 128
NOUT = BOARD * BOARD      # 36

_VMEM = pl.BlockSpec(memory_space=pltpu.MemorySpace.VMEM)


# ---------------------------------------------------------------------------
# Fused Pallas kernel: conv1 -> conv2 -> conv3 -> fc1 -> fc2 (all ReLU)
# ---------------------------------------------------------------------------
def dqn_fused_kernel(x_ref, ne_ref,
                     m1_ref, bb1_ref, m2_ref, bb2_ref, m3_ref, bb3_ref,
                     w1_ref, w1ne_ref, b1_ref, w2_ref, b2_ref, o_ref):
    # conv layers as dense conv-matrix matmuls on the padded channel-major layout.
    a = jnp.maximum(
        jnp.dot(x_ref[...], m1_ref[...], preferred_element_type=jnp.float32)
        + bb1_ref[...], 0.0)
    a = jnp.maximum(
        jnp.dot(a, m2_ref[...], preferred_element_type=jnp.float32)
        + bb2_ref[...], 0.0)
    a = jnp.maximum(
        jnp.dot(a, m3_ref[...], preferred_element_type=jnp.float32)
        + bb3_ref[...], 0.0)
    # fc1: feat @ W1e + next_element * (W1_last / 25) + b1  (1/25 pre-folded)
    h = jnp.dot(a, w1_ref[...], preferred_element_type=jnp.float32)
    h = jnp.maximum(h + ne_ref[...] * w1ne_ref[...] + b1_ref[...], 0.0)
    # fc2
    q = jnp.dot(h, w2_ref[...], preferred_element_type=jnp.float32) + b2_ref[...]
    o_ref[...] = jnp.maximum(q, 0.0)


def _dqn_pallas(x_flat, ne, pk):
    B = x_flat.shape[0]
    args = (x_flat, ne,
            pk["m1"], pk["bb1"], pk["m2"], pk["bb2"], pk["m3"], pk["bb3"],
            pk["w1e"], pk["w1ne"], pk["b1"], pk["w2"], pk["b2"])
    mats = (pk["m1"], pk["m2"], pk["m3"], pk["w1e"], pk["w2"])
    flops = 2 * B * sum(int(m.shape[0]) * int(m.shape[1]) for m in mats)
    bytes_acc = sum(int(np.prod(a.shape)) * 4 for a in args) + B * NOUT * 4
    return pl.pallas_call(
        dqn_fused_kernel,
        out_shape=jax.ShapeDtypeStruct((B, NOUT), jnp.float32),
        in_specs=[_VMEM] * len(args),
        out_specs=_VMEM,
        compiler_params=pltpu.CompilerParams(vmem_limit_bytes=32 * 1024 * 1024),
        cost_estimate=pl.CostEstimate(
            flops=flops, transcendentals=0, bytes_accessed=bytes_acc),
    )(*args)


# ---------------------------------------------------------------------------
# One-time parameter packing (host/XLA side, done once per weight set)
# ---------------------------------------------------------------------------
def _interior_lane(c, i, j):
    # lane index of conv output (c, i, j) in the padded channel-major layout
    return c * NP + (i + 1) * HP + (j + 1)


def conv_to_matrix(w):
    """w: (Cout, Cin, 3, 3) torch-style conv weight -> dense (Cin*64, Cout*64) matrix.

    Rows correspond to padded input lanes (ci, ipad, jpad); columns to padded output
    lanes (co, ipad, jpad).  Rows for padding-ring inputs are left zero, so garbage
    in ring lanes of the previous activation never propagates.
    """
    Cout, Cin = w.shape[0], w.shape[1]
    rows, cols, co_i, ci_i, kh_i, kw_i = [], [], [], [], [], []
    for i in range(BOARD):
        for j in range(BOARD):
            p_out = (i + 1) * HP + (j + 1)
            for dh in range(3):
                for dw in range(3):
                    ii, jj = i + dh, j + dw            # padded input coords
                    if 1 <= ii <= BOARD and 1 <= jj <= BOARD:   # interior input only
                        for ci in range(Cin):
                            for co in range(Cout):
                                rows.append(ci * NP + ii * HP + jj)
                                cols.append(co * NP + p_out)
                                co_i.append(co); ci_i.append(ci)
                                kh_i.append(dh); kw_i.append(dw)
    vals = w[np.array(co_i), np.array(ci_i), np.array(kh_i), np.array(kw_i)]
    M = jnp.zeros((Cin * NP, Cout * NP), jnp.float32)
    return M.at[np.array(rows), np.array(cols)].set(vals)


def pack_params(p):
    S = BOARD
    w1 = p["w_fc1"]                                    # (FEAT+1, 128), input-major
    lanes = np.array([_interior_lane(c, i, j)
                      for c in range(S) for i in range(S) for j in range(S)])
    w1e = jnp.zeros((S * NP, HID), jnp.float32).at[lanes, :].set(w1[:FEAT, :])
    return {
        "m1": conv_to_matrix(p["w_c1"]),
        "bb1": jnp.repeat(p["b_c1"], NP)[None, :],
        "m2": conv_to_matrix(p["w_c2"]),
        "bb2": jnp.repeat(p["b_c2"], NP)[None, :],
        "m3": conv_to_matrix(p["w_c3"]),
        "bb3": jnp.repeat(p["b_c3"], NP)[None, :],
        "w1e": w1e,                                    # (384, 128), ring rows zero
        "w1ne": w1[FEAT:, :] / 25.0,                   # (1, 128), 1/25 folded in
        "b1": p["b_fc1"][None, :],
        "w2": p["w_fc2"],                              # (128, 36)
        "b2": p["b_fc2"][None, :],
    }


def dqn_forward(packed, x, next_element):
    # Only per-call glue: zero-pad the 6x6 board to 8x8 and flatten to lanes.
    B = x.shape[0]
    xp = jnp.pad(x[:, 0, :, :], ((0, 0), (1, 1), (1, 1)))
    x_flat = xp.reshape(B, NP)
    return _dqn_pallas(x_flat, next_element, packed)


# ---------------------------------------------------------------------------
# Pure-JAX reference (for correctness check)
# ---------------------------------------------------------------------------
def dqn_reference(params, x, next_element):
    def conv(x, w, b):
        y = jax.lax.conv_general_dilated(
            x, w, (1, 1), ((1, 1), (1, 1)),
            dimension_numbers=("NCHW", "OIHW", "NCHW"))
        return jax.nn.relu(y + b[None, :, None, None])

    x = conv(x, params["w_c1"], params["b_c1"])
    x = conv(x, params["w_c2"], params["b_c2"])
    x = conv(x, params["w_c3"], params["b_c3"])
    feat = x.reshape(x.shape[0], -1)
    xcat = jnp.concatenate([feat, next_element / 25.0], axis=1)
    h = jax.nn.relu(xcat @ params["w_fc1"] + params["b_fc1"])
    return jax.nn.relu(h @ params["w_fc2"] + params["b_fc2"])


# ---------------------------------------------------------------------------
# Deterministic parameter init (shapes from DQN.__init__, board_size = 6)
# ---------------------------------------------------------------------------
def init_params(key, S):
    ks = jax.random.split(key, 10)

    def u(k, shape, fan_in):
        bound = 1.0 / jnp.sqrt(jnp.float32(fan_in))
        return jax.random.uniform(k, shape, jnp.float32, -bound, bound)

    F = S * S * S
    return {
        "w_c1": u(ks[0], (S, 1, 3, 3), 9),
        "b_c1": u(ks[1], (S,), 9),
        "w_c2": u(ks[2], (S, S, 3, 3), S * 9),
        "b_c2": u(ks[3], (S,), S * 9),
        "w_c3": u(ks[4], (S, S, 3, 3), S * 9),
        "b_c3": u(ks[5], (S,), S * 9),
        "w_fc1": u(ks[6], (F + 1, 128), F + 1),   # (in, out) = fc1.weight.T
        "b_fc1": u(ks[7], (128,), F + 1),
        "w_fc2": u(ks[8], (128, S * S), 128),     # (in, out) = fc2.weight.T
        "b_fc2": u(ks[9], (S * S,), 128),
    }


if __name__ == "__main__":
    key = jax.random.PRNGKey(0)
    kp, kx, kn = jax.random.split(key, 3)
    params = init_params(kp, BOARD)
    packed = pack_params(params)        # one-time weight layout transform

    x = jax.random.uniform(kx, (BATCH, 1, BOARD, BOARD), jnp.float32, 0.0, 25.0)
    next_element = jax.random.randint(kn, (BATCH, 1), 1, 25).astype(jnp.float32)

    fwd = jax.jit(dqn_forward)
    out = jax.block_until_ready(fwd(packed, x, next_element))
    ref = jax.block_until_ready(dqn_reference(params, x, next_element))

    assert out.shape == (BATCH, BOARD * BOARD), out.shape
    err = float(jnp.max(jnp.abs(out - ref)))
    assert jnp.allclose(out, ref, rtol=1e-3, atol=1e-2), f"max abs err {err}"
    print("KERNEL_OK")
</pallas_src>

<mosaic_0001>
module attributes {stable_mosaic.version = 11 : i64} {
  func.func @dqn_fused_kernel(%arg0: memref<2x64xf32, #tpu.memory_space<vmem>>, %arg1: memref<2x1xf32, #tpu.memory_space<vmem>>, %arg2: memref<64x384xf32, #tpu.memory_space<vmem>>, %arg3: memref<1x384xf32, #tpu.memory_space<vmem>>, %arg4: memref<384x384xf32, #tpu.memory_space<vmem>>, %arg5: memref<1x384xf32, #tpu.memory_space<vmem>>, %arg6: memref<384x384xf32, #tpu.memory_space<vmem>>, %arg7: memref<1x384xf32, #tpu.memory_space<vmem>>, %arg8: memref<384x128xf32, #tpu.memory_space<vmem>>, %arg9: memref<1x128xf32, #tpu.memory_space<vmem>>, %arg10: memref<1x128xf32, #tpu.memory_space<vmem>>, %arg11: memref<128x36xf32, #tpu.memory_space<vmem>>, %arg12: memref<1x36xf32, #tpu.memory_space<vmem>>, %arg13: memref<2x36xf32, #tpu.memory_space<vmem>>) attributes {dimension_semantics = [], scalar_prefetch = 0 : i64, scratch_operands = 0 : i64, tpu.core_type = #tpu.core_type<tc>} {
    %c0 = arith.constant 0 : index
    %c0_0 = arith.constant 0 : index
    %0 = vector.load %arg0[%c0, %c0_0] : memref<2x64xf32, #tpu.memory_space<vmem>>, vector<2x64xf32>
    %c0_1 = arith.constant 0 : index
    %c0_2 = arith.constant 0 : index
    %1 = vector.load %arg2[%c0_1, %c0_2] : memref<64x384xf32, #tpu.memory_space<vmem>>, vector<64x384xf32>
    %cst = arith.constant dense<0.000000e+00> : vector<2x384xf32>
    %2 = tpu.matmul %0, %1, %cst {dimension_numbers = #tpu.dot_dimension_numbers<[1], [0], [0], [1], [0, 0, 1, 1], [], []>} : vector<2x64xf32>, vector<64x384xf32>, vector<2x384xf32> -> vector<2x384xf32>
    %c0_3 = arith.constant 0 : index
    %c0_4 = arith.constant 0 : index
    %3 = vector.load %arg3[%c0_3, %c0_4] : memref<1x384xf32, #tpu.memory_space<vmem>>, vector<1x384xf32>
    %4 = vector.broadcast %3 : vector<1x384xf32> to vector<2x384xf32>
    %5 = arith.addf %2, %4 : vector<2x384xf32>
    %cst_5 = arith.constant 0.000000e+00 : f32
    %6 = vector.broadcast %cst_5 : f32 to vector<2x384xf32>
    %7 = arith.maximumf %5, %6 : vector<2x384xf32>
    %c0_6 = arith.constant 0 : index
    %c0_7 = arith.constant 0 : index
    %8 = vector.load %arg4[%c0_6, %c0_7] : memref<384x384xf32, #tpu.memory_space<vmem>>, vector<384x384xf32>
    %cst_8 = arith.constant dense<0.000000e+00> : vector<2x384xf32>
    %9 = tpu.matmul %7, %8, %cst_8 {dimension_numbers = #tpu.dot_dimension_numbers<[1], [0], [0], [1], [0, 0, 1, 1], [], []>} : vector<2x384xf32>, vector<384x384xf32>, vector<2x384xf32> -> vector<2x384xf32>
    %c0_9 = arith.constant 0 : index
    %c0_10 = arith.constant 0 : index
    %10 = vector.load %arg5[%c0_9, %c0_10] : memref<1x384xf32, #tpu.memory_space<vmem>>, vector<1x384xf32>
    %11 = vector.broadcast %10 : vector<1x384xf32> to vector<2x384xf32>
    %12 = arith.addf %9, %11 : vector<2x384xf32>
    %cst_11 = arith.constant 0.000000e+00 : f32
    %13 = vector.broadcast %cst_11 : f32 to vector<2x384xf32>
    %14 = arith.maximumf %12, %13 : vector<2x384xf32>
    %c0_12 = arith.constant 0 : index
    %c0_13 = arith.constant 0 : index
    %15 = vector.load %arg6[%c0_12, %c0_13] : memref<384x384xf32, #tpu.memory_space<vmem>>, vector<384x384xf32>
    %cst_14 = arith.constant dense<0.000000e+00> : vector<2x384xf32>
    %16 = tpu.matmul %14, %15, %cst_14 {dimension_numbers = #tpu.dot_dimension_numbers<[1], [0], [0], [1], [0, 0, 1, 1], [], []>} : vector<2x384xf32>, vector<384x384xf32>, vector<2x384xf32> -> vector<2x384xf32>
    %c0_15 = arith.constant 0 : index
    %c0_16 = arith.constant 0 : index
    %17 = vector.load %arg7[%c0_15, %c0_16] : memref<1x384xf32, #tpu.memory_space<vmem>>, vector<1x384xf32>
    %18 = vector.broadcast %17 : vector<1x384xf32> to vector<2x384xf32>
    %19 = arith.addf %16, %18 : vector<2x384xf32>
    %cst_17 = arith.constant 0.000000e+00 : f32
    %20 = vector.broadcast %cst_17 : f32 to vector<2x384xf32>
    %21 = arith.maximumf %19, %20 : vector<2x384xf32>
    %c0_18 = arith.constant 0 : index
    %c0_19 = arith.constant 0 : index
    %22 = vector.load %arg8[%c0_18, %c0_19] : memref<384x128xf32, #tpu.memory_space<vmem>>, vector<384x128xf32>
    %cst_20 = arith.constant dense<0.000000e+00> : vector<2x128xf32>
    %23 = tpu.matmul %21, %22, %cst_20 {dimension_numbers = #tpu.dot_dimension_numbers<[1], [0], [0], [1], [0, 0, 1, 1], [], []>} : vector<2x384xf32>, vector<384x128xf32>, vector<2x128xf32> -> vector<2x128xf32>
    %c0_21 = arith.constant 0 : index
    %c0_22 = arith.constant 0 : index
    %24 = vector.load %arg1[%c0_21, %c0_22] : memref<2x1xf32, #tpu.memory_space<vmem>>, vector<2x1xf32>
    %c0_23 = arith.constant 0 : index
    %c0_24 = arith.constant 0 : index
    %25 = vector.load %arg9[%c0_23, %c0_24] : memref<1x128xf32, #tpu.memory_space<vmem>>, vector<1x128xf32>
    %26 = vector.broadcast %24 : vector<2x1xf32> to vector<2x128xf32>
    %27 = vector.broadcast %25 : vector<1x128xf32> to vector<2x128xf32>
    %28 = arith.mulf %26, %27 : vector<2x128xf32>
    %29 = arith.addf %23, %28 : vector<2x128xf32>
    %c0_25 = arith.constant 0 : index
    %c0_26 = arith.constant 0 : index
    %30 = vector.load %arg10[%c0_25, %c0_26] : memref<1x128xf32, #tpu.memory_space<vmem>>, vector<1x128xf32>
    %31 = vector.broadcast %30 : vector<1x128xf32> to vector<2x128xf32>
    %32 = arith.addf %29, %31 : vector<2x128xf32>
    %cst_27 = arith.constant 0.000000e+00 : f32
    %33 = vector.broadcast %cst_27 : f32 to vector<2x128xf32>
    %34 = arith.maximumf %32, %33 : vector<2x128xf32>
    %c0_28 = arith.constant 0 : index
    %c0_29 = arith.constant 0 : index
    %35 = vector.load %arg11[%c0_28, %c0_29] : memref<128x36xf32, #tpu.memory_space<vmem>>, vector<128x36xf32>
    %cst_30 = arith.constant dense<0.000000e+00> : vector<2x36xf32>
    %36 = tpu.matmul %34, %35, %cst_30 {dimension_numbers = #tpu.dot_dimension_numbers<[1], [0], [0], [1], [0, 0, 1, 1], [], []>} : vector<2x128xf32>, vector<128x36xf32>, vector<2x36xf32> -> vector<2x36xf32>
    %c0_31 = arith.constant 0 : index
    %c0_32 = arith.constant 0 : index
    %37 = vector.load %arg12[%c0_31, %c0_32] : memref<1x36xf32, #tpu.memory_space<vmem>>, vector<1x36xf32>
    %38 = vector.broadcast %37 : vector<1x36xf32> to vector<2x36xf32>
    %39 = arith.addf %36, %38 : vector<2x36xf32>
    %cst_33 = arith.constant 0.000000e+00 : f32
    %40 = vector.broadcast %cst_33 : f32 to vector<2x36xf32>
    %41 = arith.maximumf %39, %40 : vector<2x36xf32>
    %c0_34 = arith.constant 0 : index
    %c0_35 = arith.constant 0 : index
    %42 = vector.load %arg13[%c0_34, %c0_35] : memref<2x36xf32, #tpu.memory_space<vmem>>, vector<2x36xf32>
    tpu.vector_store %arg13[%c0_34, %c0_35], %41 {strides = array<i32>} : memref<2x36xf32, #tpu.memory_space<vmem>>, vector<2x36xf32>,
    return
  }
}

</mosaic_0001>

<bundles_post_ra>
// kernel: dqn_forward.1
= control target key start
LH: loop header
LB: loop body
LE: loop exit
PB: predicated region body
PF: predicated region fallthrough
CT: control target
= control target key end

     0   :  { %18 = vsyncpa [#allocation3], 0  ;;  %s2728_s0 = inlined_call_operand.vmem [shape: f32[2,64], index: 0, kind: input, shape index: {}]   ;;  %s2729_s1 = inlined_call_operand.vmem [shape: f32[2,1], index: 1, kind: input, shape index: {}]   ;;  %s2730_s2 = inlined_call_operand.vmem [shape: f32[64,384], index: 2, kind: input, shape index: {}]   ;;  %s2731_s3 = inlined_call_operand.vmem [shape: f32[1,384], index: 3, kind: input, shape index: {}]   ;;  %s2732_s4 = inlined_call_operand.hbm [shape: f32[384,384], index: 4, kind: input, shape index: {}]   ;;  %s2733_s5 = inlined_call_operand.vmem [shape: f32[1,384], index: 5, kind: input, shape index: {}]   ;;  %s2734_s6 = inlined_call_operand.hbm [shape: f32[384,384], index: 6, kind: input, shape index: {}]   ;;  %s2735_s7 = inlined_call_operand.vmem [shape: f32[1,384], index: 7, kind: input, shape index: {}]   ;;  %s2736_s8 = inlined_call_operand.hbm [shape: f32[384,128], index: 8, kind: input, shape index: {}]   ;;  %s2737_s9 = inlined_call_operand.vmem [shape: f32[1,128], index: 9, kind: input, shape index: {}]   ;;  %s2738_s10 = inlined_call_operand.vmem [shape: f32[1,128], index: 10, kind: input, shape index: {}]   ;;  %s2739_s11 = inlined_call_operand.vmem [shape: f32[128,36], index: 11, kind: input, shape index: {}]   ;;  %s2740_s12 = inlined_call_operand.vmem [shape: f32[1,36], index: 12, kind: input, shape index: {}]   ;;  %s2741_s13 = inlined_call_operand.hbm [shape: f32[2,36], index: 13, kind: output, shape index: {}]  }
   0x1   :  { %19 = vsyncpa [#allocation6], 0 }
   0x2   :  { %20 = vsyncpa [#allocation4], 0  ;;  %s2364_s25 = smov [#allocation5]   ;;  %s2365_s27 = smov [#allocation2]  }
   0x3   :  { %s48_s26 = sshll.u32 %s2364_s25, 4  ;;  %s34_s28 = sshll.u32 %s2365_s27, 4  ;;  %s49_s26 = int_to_ptr.vmem [resolvable:$true] %s48_s26  ;;  %s2446_s28 = int_to_ptr.vmem [resolvable:$true] %s34_s28 }
   0x4   :  { %s2270_s14 = scalar_lea.hbm %s2734_s6, 18432 }
   0x5   :  { %p2271_p0 = scmp.ne.s32.totalorder %s2734_s6, %s2270_s14  ;;  %p2274_p1 = scmp.lt.u32.totalorder %s2270_s14, %s2734_s6 }
   0x7   :  { %p2276_p2 = pnand %p2274_p1, %p2271_p0 }
   0x9   :  { %2279 = shalt.err (!%p2276_p2)
}
   0xa   :  { %s2280_s19 = scalar_lea.vmem %s49_s26, 18432  ;;  %p2285_p4 = scmp.lt.s32.totalorder %s49_s26, %s49_s26 }
   0xb   :  { %p2281_p3 = scmp.ne.s32.totalorder %s49_s26, %s2280_s19  ;;  %p2286_p5 = scmp.lt.s32.totalorder %s2280_s19, %s2280_s19 }
   0xd   :  { %p2287_p6 = por %p2286_p5, %p2285_p4 }
   0xf   :  { %p2288_p7 = pnand %p2287_p6, %p2281_p3 }
  0x11   :  { %2291 = shalt.err (!%p2288_p7)
}
  0x12   :  { %s2366_s20 = smov 384   ;;  %s2367_s21 = smov 24  }
  0x13   :  { %54 = dma.hbm_to_vmem [thread:$0]  %s2734_s6, 18432, %s49_s26, [#allocation6], %s2366_s20, %s2366_s20, %s2367_s21  }
  0x14   :  { %s2292_s27 = scalar_lea.hbm %s2732_s4, 18432 }
  0x15   :  { %p2293_p8 = scmp.ne.s32.totalorder %s2732_s4, %s2292_s27  ;;  %p2296_p9 = scmp.lt.u32.totalorder %s2292_s27, %s2732_s4 }
  0x17   :  { %p2298_p10 = pnand %p2296_p9, %p2293_p8 }
  0x19   :  { %2301 = shalt.err (!%p2298_p10)
}
  0x1a   :  { %s2302_s16 = scalar_lea.vmem %s2446_s28, 18432  ;;  %p2307_p12 = scmp.lt.s32.totalorder %s2446_s28, %s2446_s28 }
  0x1b   :  { %p2303_p11 = scmp.ne.s32.totalorder %s2446_s28, %s2302_s16  ;;  %p2308_p13 = scmp.lt.s32.totalorder %s2302_s16, %s2302_s16 }
  0x1d   :  { %p2309_p0 = por %p2308_p13, %p2307_p12 }
  0x1f   :  { %p2310_p1 = pnand %p2309_p0, %p2303_p11 }
  0x21   :  { %2313 = shalt.err (!%p2310_p1)
}
  0x22   :  { %40 = dma.hbm_to_vmem [thread:$0]  %s2732_s4, 18432, %s2446_s28, [#allocation3], %s2366_s20, %s2366_s20, %s2367_s21  }
  0x23   :  { %s2368_s17 = smov [#allocation7]   ;;  %s2314_s23 = scalar_lea.hbm %s2736_s8, 6144 }
  0x24   :  { %s62_s18 = sshll.u32 %s2368_s17, 4  ;;  %p2315_p2 = scmp.ne.s32.totalorder %s2736_s8, %s2314_s23  ;;  %s63_s18 = int_to_ptr.vmem [resolvable:$true] %s62_s18 }
  0x25   :  { %p2318_p3 = scmp.lt.u32.totalorder %s2314_s23, %s2736_s8 }
  0x27   :  { %p2320_p4 = pnand %p2318_p3, %p2315_p2 }
  0x29   :  { %2323 = shalt.err (!%p2320_p4)
}
  0x2a   :  { %s2324_s30 = scalar_lea.vmem %s63_s18, 6144  ;;  %p2329_p6 = scmp.lt.s32.totalorder %s63_s18, %s63_s18 }
  0x2b   :  { %p2325_p5 = scmp.ne.s32.totalorder %s63_s18, %s2324_s30  ;;  %p2330_p7 = scmp.lt.s32.totalorder %s2324_s30, %s2324_s30 }
  0x2d   :  { %p2331_p8 = por %p2330_p7, %p2329_p6 }
  0x2f   :  { %p2332_p9 = pnand %p2331_p8, %p2325_p5 }
  0x31   :  { %2335 = shalt.err (!%p2332_p9)
}
  0x32   :  { %s2369_s4 = smov 128   ;;  %s2370_s28 = smov 8  }
  0x33   :  { %68 = dma.hbm_to_vmem [thread:$0]  %s2736_s8, 6144, %s63_s18, [#allocation6], %s2369_s4, %s2369_s4, %s2370_s28  }
  0x34   :  { %2358 = dma.done.wait [#allocation3], 18432  }
  0x35   :  { %2359 = vsyncadd [#allocation3], 4294948864 }
  0x36   :  { %2360 = dma.done.wait [#allocation6], 24576  }
  0x37   :  { %2361 = vsyncadd [#allocation6], 4294942720  ;;  %v2371_v0 = vmov 0.0   ;;  %v88_v1 = vld [vmem:[%s2730_s2 + $0x8] sm:$0xff]  ;;  %v91_v2 = vld [vmem:[%s2730_s2 + $0x20] sm:$0xff]  ;;  %vm128_vm0 = vcmask 523264  }
  0x38   :  { %196 = vmatprep.mubr.f32.mxu1 %v2371_v0  ;;  %v87_v3 = vld [vmem:[%s2730_s2] sm:$0xff]  ;;  %v1837_v4 = vpack.c.bf16 %v91_v2, %v88_v1  ;;  %v90_v5 = vld [vmem:[%s2730_s2 + $0x18] sm:$0xff]  ;;  %v97_v7 = vld [vmem:[%s2730_s2 + $0x50] sm:$0xff]  ;;  %v2372_v48 = vmov 0.0|0.0   ;;  %vm2373_vm1 = vmmov 0   ;;  %vm1473_vm2 = vcmask 287744  }
  0x39   :  { %v94_v6 = vld [vmem:[%s2730_s2 + $0x38] sm:$0xff]  ;;  %v1839_v8 = vpack.c.bf16 %v90_v5, %v87_v3  ;;  %v93_v10 = vld [vmem:[%s2730_s2 + $0x30] sm:$0xff]  ;;  %v96_v11 = vld [vmem:[%s2730_s2 + $0x48] sm:$0xff] }
  0x3a   :  { %v1841_v9 = vpack.c.bf16 %v97_v7, %v94_v6  ;;  %v100_v12 = vld [vmem:[%s2730_s2 + $0x68] sm:$0xff]  ;;  %1838 = vmatprep.subr.bf16.mxu1 %v1837_v4  ;;  %v103_v13 = vld [vmem:[%s2730_s2 + $0x80] sm:$0xff]  ;;  %v1843_v14 = vpack.c.bf16 %v96_v11, %v93_v10  ;;  %v102_v17 = vld [vmem:[%s2730_s2 + $0x78] sm:$0xff] }
  0x3b   :  { %1840 = vmatpush1.bf16.msra.mxu1 %v1839_v8  ;;  %v1845_v15 = vpack.c.bf16 %v103_v13, %v100_v12  ;;  %v99_v16 = vld [vmem:[%s2730_s2 + $0x60] sm:$0xff]  ;;  %v106_v18 = vld [vmem:[%s2730_s2 + $0x98] sm:$0xff]  ;;  %v109_v19 = vld [vmem:[%s2730_s2 + $0xb0] sm:$0xff] }
  0x3c   :  { %1842 = vmatprep.subr.bf16.mxu1 %v1841_v9  ;;  %v105_v20 = vld [vmem:[%s2730_s2 + $0x90] sm:$0xff]  ;;  %v1847_v21 = vpack.c.bf16 %v102_v17, %v99_v16  ;;  %v108_v22 = vld [vmem:[%s2730_s2 + $0xa8] sm:$0xff]  ;;  %v280_v24 = vld [vmem:[#allocation2 + $0x20] sm:$0xff]  ;;  %v1849_v25 = vpack.c.bf16 %v109_v19, %v106_v18 }
  0x3d   :  { %v277_v23 = vld [vmem:[#allocation2 + $0x8] sm:$0xff]  ;;  %v276_v27 = vld [vmem:[#allocation2] sm:$0xff]  ;;  %v279_v28 = vld [vmem:[#allocation2 + $0x18] sm:$0xff]  ;;  %v1851_v37 = vpack.c.bf16 %v108_v22, %v105_v20 }
  0x3e   :  { %v1865_v26 = vpack.c.bf16 %v280_v24, %v277_v23  ;;  %v283_v29 = vld [vmem:[#allocation2 + $0x38] sm:$0xff]  ;;  %v1867_v30 = vpack.c.bf16 %v279_v28, %v276_v27  ;;  %v286_v31 = vld [vmem:[#allocation2 + $0x50] sm:$0xff]  ;;  %v285_v33 = vld [vmem:[#allocation2 + $0x48] sm:$0xff] }
  0x3f   :  { %1844 = vmatpush1.bf16.msra.mxu1 %v1843_v14  ;;  %v282_v32 = vld [vmem:[#allocation2 + $0x30] sm:$0xff]  ;;  %v1869_v34 = vpack.c.bf16 %v286_v31, %v283_v29  ;;  %v289_v35 = vld [vmem:[#allocation2 + $0x68] sm:$0xff]  ;;  %v292_v36 = vld [vmem:[#allocation2 + $0x80] sm:$0xff] }
  0x40   :  { %1846 = vmatprep.subr.bf16.mxu1 %v1845_v15  ;;  %1866 = vmatprep.subr.bf16.mxu0 %v1865_v26  ;;  %v1871_v38 = vpack.c.bf16 %v285_v33, %v282_v32  ;;  %v89_v39 = vld [vmem:[%s2730_s2 + $0x10] sm:$0xff]  ;;  %v92_v40 = vld [vmem:[%s2730_s2 + $0x28] sm:$0xff]  ;;  %v1873_v41 = vpack.c.bf16 %v292_v36, %v289_v35  ;;  %v288_v42 = vld [vmem:[#allocation2 + $0x60] sm:$0xff] }
  0x41   :  { %1868 = vmatpush1.bf16.msra.mxu0 %v1867_v30  ;;  %v291_v43 = vld [vmem:[#allocation2 + $0x78] sm:$0xff]  ;;  %v298_v45 = vld [vmem:[#allocation2 + $0xb0] sm:$0xff]  ;;  %v2547_v46 = vld [vmem:[%s2728_s0] sm:$0x3]  ;;  %v1854_v47 = vpack.c.bf16 %v92_v40, %v89_v39 }
  0x42   :  { %1870 = vmatprep.subr.bf16.mxu0 %v1869_v34  ;;  %v295_v44 = vld [vmem:[#allocation2 + $0x98] sm:$0xff]  ;;  %v95_v49 = vld [vmem:[%s2730_s2 + $0x40] sm:$0xff]  ;;  %v1875_v51 = vpack.c.bf16 %v291_v43, %v288_v42  ;;  %v294_v53 = vld [vmem:[#allocation2 + $0x90] sm:$0xff] }
  0x43   :  { %1848 = vmatpush1.bf16.msra.mxu1 %v1847_v21  ;;  %v98_v50 = vld [vmem:[%s2730_s2 + $0x58] sm:$0xff]  ;;  %v1877_v52 = vpack.c.bf16 %v298_v45, %v295_v44  ;;  %v297_v54 = vld [vmem:[#allocation2 + $0xa8] sm:$0xff]  ;;  %v304_v56 = vld [vmem:[#allocation2 + $0xe0] sm:$0xff] }
  0x44   :  { %1850 = vmatprep.subr.bf16.mxu1 %v1849_v25  ;;  %v301_v55 = vld [vmem:[#allocation2 + $0xc8] sm:$0xff]  ;;  %v1857_v57 = vpack.c.bf16 %v98_v50, %v95_v49  ;;  %v101_v58 = vld [vmem:[%s2730_s2 + $0x70] sm:$0xff]  ;;  %v1879_v60 = vpack.c.bf16 %v297_v54, %v294_v53  ;;  %v300_v62 = vld [vmem:[#allocation2 + $0xc0] sm:$0xff] }
  0x45   :  { %1872 = vmatpush1.bf16.msra.mxu0 %v1871_v38  ;;  %v104_v59 = vld [vmem:[%s2730_s2 + $0x88] sm:$0xff]  ;;  %v1881_v61 = vpack.c.bf16 %v304_v56, %v301_v55  ;;  %v303_v63 = vld [vmem:[#allocation2 + $0xd8] sm:$0xff]  ;;  %v310_v2 = vld [vmem:[#allocation2 + $0x110] sm:$0xff] }
  0x46   :  { %1874 = vmatprep.subr.bf16.mxu0 %v1873_v41  ;;  %v307_v1 = vld [vmem:[#allocation2 + $0xf8] sm:$0xff]  ;;  %v1860_v3 = vpack.c.bf16 %v104_v59, %v101_v58  ;;  %v107_v4 = vld [vmem:[%s2730_s2 + $0xa0] sm:$0xff]  ;;  %v1883_v6 = vpack.c.bf16 %v303_v63, %v300_v62  ;;  %v306_v7 = vld [vmem:[#allocation2 + $0xf0] sm:$0xff] }
  0x47   :  { %1852 = vmatpush1.bf16.msra.mxu1 %v1851_v37  ;;  %v110_v5 = vld [vmem:[%s2730_s2 + $0xb8] sm:$0xff]  ;;  %v1885_v8 = vpack.c.bf16 %v310_v2, %v307_v1  ;;  %v309_v9 = vld [vmem:[#allocation2 + $0x108] sm:$0xff]  ;;  %v326_v10 = vld [vmem:[#allocation2 + $0x190] sm:$0xff] }
  0x48   :  { %1853 = vmatprep.subr.bf16.mxu1 %v2372_v48  ;;  %v329_v11 = vld [vmem:[#allocation2 + $0x1a8] sm:$0xff]  ;;  %v316_v13 = vld [vmem:[#allocation2 + $0x140] sm:$0xff]  ;;  %v1863_v14 = vpack.c.bf16 %v110_v5, %v107_v4  ;;  %v1887_v15 = vpack.c.bf16 %v309_v9, %v306_v7  ;;  %v278_v18 = vld [vmem:[#allocation2 + $0x10] sm:$0xff] }
  0x49   :  { %1876 = vmatpush1.bf16.msra.mxu0 %v1875_v51  ;;  %v313_v12 = vld [vmem:[#allocation2 + $0x128] sm:$0xff]  ;;  %v312_v16 = vld [vmem:[#allocation2 + $0x120] sm:$0xff]  ;;  %v1961_v17 = vpack.c.bf16 %v329_v11, %v326_v10  ;;  %v315_v21 = vld [vmem:[#allocation2 + $0x138] sm:$0xff] }
  0x4a   :  { %1491 = vmatmul.mubr.msk.f32.vlgmr.msra.gmra.mrb[0].mxu1 %vm128_vm0, %v2547_v46  ;;  %1878 = vmatprep.subr.bf16.mxu0 %v1877_v52  ;;  %v281_v19 = vld [vmem:[#allocation2 + $0x28] sm:$0xff]  ;;  %v1889_v20 = vpack.c.bf16 %v316_v13, %v313_v12  ;;  %v332_v22 = vld [vmem:[#allocation2 + $0x1c0] sm:$0xff]  ;;  %v335_v23 = vld [vmem:[#allocation2 + $0x1d8] sm:$0xff]  ;;  %v1891_v27 = vpack.c.bf16 %v315_v21, %v312_v16 }
  0x4b   :  { %1855 = vmatpush3.bf16.msra.mxu1 %v1854_v47  ;;  %1694 = vmatprep.mubr.msk.f32.mxu1 %vm2373_vm1, %v2371_v0  ;;  %v319_v24 = vld [vmem:[#allocation2 + $0x158] sm:$0xff]  ;;  %v322_v25 = vld [vmem:[#allocation2 + $0x170] sm:$0xff]  ;;  %v1963_v26 = vpack.c.bf16 %v281_v19, %v278_v18  ;;  %v1965_v29 = vpack.c.bf16 %v335_v23, %v332_v22  ;;  %v284_v30 = vld [vmem:[#allocation2 + $0x40] sm:$0xff] }
  0x4c   :  { %1856 = vmatprep.subr.bf16.mxu1 %v2372_v48  ;;  %v318_v28 = vld [vmem:[#allocation2 + $0x150] sm:$0xff]  ;;  %v287_v31 = vld [vmem:[#allocation2 + $0x58] sm:$0xff]  ;;  %v1893_v32 = vpack.c.bf16 %v322_v25, %v319_v24  ;;  %v321_v33 = vld [vmem:[#allocation2 + $0x168] sm:$0xff] }
  0x4d   :  { %1880 = vmatpush1.bf16.msra.mxu0 %v1879_v60  ;;  %v338_v34 = vld [vmem:[#allocation2 + $0x1f0] sm:$0xff]  ;;  %v341_v35 = vld [vmem:[#allocation2 + $0x208] sm:$0xff]  ;;  %v328_v37 = vld [vmem:[#allocation2 + $0x1a0] sm:$0xff]  ;;  %v1967_v38 = vpack.c.bf16 %v287_v31, %v284_v30  ;;  %v1895_v39 = vpack.c.bf16 %v321_v33, %v318_v28 }
  0x4e   :  { %1882 = vmatprep.subr.bf16.mxu0 %v1881_v61  ;;  %v325_v36 = vld [vmem:[#allocation2 + $0x188] sm:$0xff]  ;;  %v324_v40 = vld [vmem:[#allocation2 + $0x180] sm:$0xff]  ;;  %v1969_v41 = vpack.c.bf16 %v341_v35, %v338_v34  ;;  %v290_v42 = vld [vmem:[#allocation2 + $0x70] sm:$0xff] }
  0x4f   :  { %1858 = vmatpush3.bf16.msra.mxu1 %v1857_v57  ;;  %v293_v43 = vld [vmem:[#allocation2 + $0x88] sm:$0xff]  ;;  %v1897_v44 = vpack.c.bf16 %v328_v37, %v325_v36  ;;  %v327_v45 = vld [vmem:[#allocation2 + $0x198] sm:$0xff]  ;;  %v344_v47 = vld [vmem:[#allocation2 + $0x220] sm:$0xff] }
  0x50   :  { %1859 = vmatprep.subr.bf16.mxu1 %v2372_v48  ;;  %v347_v49 = vld [vmem:[#allocation2 + $0x238] sm:$0xff]  ;;  %v334_v51 = vld [vmem:[#allocation2 + $0x1d0] sm:$0xff]  ;;  %v1899_v52 = vpack.c.bf16 %v327_v45, %v324_v40  ;;  %v296_v55 = vld [vmem:[#allocation2 + $0xa0] sm:$0xff] }
  0x51   :  { %1884 = vmatpush1.bf16.msra.mxu0 %v1883_v6  ;;  %v331_v50 = vld [vmem:[#allocation2 + $0x1b8] sm:$0xff]  ;;  %v330_v53 = vld [vmem:[#allocation2 + $0x1b0] sm:$0xff]  ;;  %v1973_v54 = vpack.c.bf16 %v347_v49, %v344_v47  ;;  %v333_v58 = vld [vmem:[#allocation2 + $0x1c8] sm:$0xff] }
  0x52   :  { %1886 = vmatprep.subr.bf16.mxu0 %v1885_v8  ;;  %v299_v56 = vld [vmem:[#allocation2 + $0xb8] sm:$0xff]  ;;  %v1901_v57 = vpack.c.bf16 %v334_v51, %v331_v50  ;;  %v350_v59 = vld [vmem:[#allocation2 + $0x250] sm:$0xff]  ;;  %v353_v60 = vld [vmem:[#allocation2 + $0x268] sm:$0xff]  ;;  %v1903_v1 = vpack.c.bf16 %v333_v58, %v330_v53 }
  0x53   :  { %1861 = vmatpush3.bf16.msra.mxu1 %v1860_v3  ;;  %v337_v61 = vld [vmem:[#allocation2 + $0x1e8] sm:$0xff]  ;;  %v340_v62 = vld [vmem:[#allocation2 + $0x200] sm:$0xff]  ;;  %v1975_v63 = vpack.c.bf16 %v299_v56, %v296_v55  ;;  %v1977_v3 = vpack.c.bf16 %v353_v60, %v350_v59  ;;  %v302_v4 = vld [vmem:[#allocation2 + $0xd0] sm:$0xff] }
  0x54   :  { %1862 = vmatprep.subr.bf16.mxu1 %v2372_v48  ;;  %v336_v2 = vld [vmem:[#allocation2 + $0x1e0] sm:$0xff]  ;;  %v305_v5 = vld [vmem:[#allocation2 + $0xe8] sm:$0xff]  ;;  %v1905_v6 = vpack.c.bf16 %v340_v62, %v337_v61  ;;  %v339_v7 = vld [vmem:[#allocation2 + $0x1f8] sm:$0xff]  ;;  %v113_v62 = vlaneseq }
  0x55   :  { %1888 = vmatpush1.bf16.msra.mxu0 %v1887_v15  ;;  %v356_v8 = vld [vmem:[#allocation2 + $0x280] sm:$0xff]  ;;  %v359_v9 = vld [vmem:[#allocation2 + $0x298] sm:$0xff]  ;;  %v346_v11 = vld [vmem:[#allocation2 + $0x230] sm:$0xff]  ;;  %v1979_v12 = vpack.c.bf16 %v305_v5, %v302_v4  ;;  %v1907_v13 = vpack.c.bf16 %v339_v7, %v336_v2 }
  0x56   :  { %1890 = vmatprep.subr.bf16.mxu0 %v1889_v20  ;;  %v343_v10 = vld [vmem:[#allocation2 + $0x218] sm:$0xff]  ;;  %v1981_v15 = vpack.c.bf16 %v359_v9, %v356_v8  ;;  %v308_v16 = vld [vmem:[#allocation2 + $0x100] sm:$0xff]  ;;  %v345_v19 = vld [vmem:[#allocation2 + $0x228] sm:$0xff] }
  0x57   :  { %1864 = vmatpush3.bf16.msra.mxu1 %v1863_v14  ;;  %v342_v14 = vld [vmem:[#allocation2 + $0x210] sm:$0xff]  ;;  %v1909_v18 = vpack.c.bf16 %v346_v11, %v343_v10  ;;  %v365_v21 = vld [vmem:[#allocation2 + $0x2c8] sm:$0xff]  ;;  %v352_v23 = vld [vmem:[#allocation2 + $0x260] sm:$0xff] }
  0x58   :  { %1962 = vmatprep.subr.bf16.mxu1 %v1961_v17  ;;  %v311_v17 = vld [vmem:[#allocation2 + $0x118] sm:$0xff]  ;;  %v362_v20 = vld [vmem:[#allocation2 + $0x2b0] sm:$0xff]  ;;  %v349_v22 = vld [vmem:[#allocation2 + $0x248] sm:$0xff]  ;;  %v1911_v25 = vpack.c.bf16 %v345_v19, %v342_v14 }
  0x59   :  { %1892 = vmatpush1.bf16.msra.mxu0 %v1891_v27  ;;  %v1983_v24 = vpack.c.bf16 %v311_v17, %v308_v16  ;;  %v314_v27 = vld [vmem:[#allocation2 + $0x130] sm:$0xff]  ;;  %v317_v28 = vld [vmem:[#allocation2 + $0x148] sm:$0xff]  ;;  %v348_v30 = vld [vmem:[#allocation2 + $0x240] sm:$0xff] }
  0x5a   :  { %1695 = vmatmul.mubr.msk.f32.vlgmr.msra.gmra.mrb[2].mxu1 %vm128_vm0, %v2547_v46  ;;  %1894 = vmatprep.subr.bf16.mxu0 %v1893_v32  ;;  %v1971_v46 = vpack.c.bf16 %v293_v43, %v290_v42  ;;  %v351_v31 = vld [vmem:[#allocation2 + $0x258] sm:$0xff]  ;;  %v358_v33 = vld [vmem:[#allocation2 + $0x290] sm:$0xff]  ;;  %v1987_v34 = vpack.c.bf16 %v317_v28, %v314_v27  ;;  %v364_v40 = vld [vmem:[#allocation2 + $0x2c0] sm:$0xff] }
  0x5b   :  { %1964 = vmatpush3.bf16.msra.mxu1 %v1963_v26  ;;  %v1985_v26 = vpack.c.bf16 %v365_v21, %v362_v20  ;;  %v355_v32 = vld [vmem:[#allocation2 + $0x278] sm:$0xff]  ;;  %v1915_v35 = vpack.c.bf16 %v351_v31, %v348_v30  ;;  %v354_v37 = vld [vmem:[#allocation2 + $0x270] sm:$0xff]  ;;  %v360_v43 = vld [vmem:[#allocation2 + $0x2a0] sm:$0xff] }
  0x5c   :  { %1966 = vmatprep.subr.bf16.mxu1 %v1965_v29  ;;  %v1913_v29 = vpack.c.bf16 %v352_v23, %v349_v22  ;;  %v1917_v36 = vpack.c.bf16 %v358_v33, %v355_v32  ;;  %v367_v47 = vld [vmem:[#allocation2 + $0x2d8] sm:$0xff]  ;;  %v370_v49 = vld [vmem:[#allocation2 + $0x2f0] sm:$0xff]  ;;  %v368_v50 = vld [vmem:[#allocation2 + $0x2e0] sm:$0xff] }
  0x5d   :  { %1896 = vmatpush1.bf16.msra.mxu0 %v1895_v39  ;;  %v361_v39 = vld [vmem:[#allocation2 + $0x2a8] sm:$0xff]  ;;  %v1925_v51 = vpack.c.bf16 %v370_v49, %v367_v47  ;;  %v320_v56 = vld [vmem:[#allocation2 + $0x160] sm:$0xff]  ;;  %v375_v10 = vld [vmem:[#allocation2 + $0x318] sm:$0xff] }
  0x5e   :  { %1898 = vmatprep.subr.bf16.mxu0 %v1897_v44  ;;  %v1921_v42 = vpack.c.bf16 %v364_v40, %v361_v39  ;;  %v363_v44 = vld [vmem:[#allocation2 + $0x2b8] sm:$0xff]  ;;  %v369_v53 = vld [vmem:[#allocation2 + $0x2e8] sm:$0xff]  ;;  %v376_v60 = vld [vmem:[#allocation2 + $0x320] sm:$0xff] }
  0x5f   :  { %1968 = vmatpush3.bf16.msra.mxu1 %v1967_v38  ;;  %v357_v38 = vld [vmem:[#allocation2 + $0x288] sm:$0xff]  ;;  %v1923_v45 = vpack.c.bf16 %v363_v44, %v360_v43  ;;  %v2586_v2 = vld [vmem:[%s2731_s3] sm:$0x7]  ;;  %v374_v11 = vld [vmem:[#allocation2 + $0x310] sm:$0xff] }
  0x60   :  { %1970 = vmatprep.subr.bf16.mxu1 %v1969_v41  ;;  %v1919_v41 = vpack.c.bf16 %v357_v38, %v354_v37  ;;  %v373_v59 = vld [vmem:[#allocation2 + $0x308] sm:$0xff]  ;;  %v372_v7 = vld [vmem:[#allocation2 + $0x300] sm:$0xff]  ;;  %v379_v14 = vld [vmem:[#allocation2 + $0x338] sm:$0xff] }
  0x61   :  { %1900 = vmatpush1.bf16.msra.mxu0 %v1899_v52  ;;  %v366_v52 = vld [vmem:[#allocation2 + $0x2d0] sm:$0xff]  ;;  %v1929_v61 = vpack.c.bf16 %v376_v60, %v373_v59  ;;  %v1931_v17 = vpack.c.bf16 %v375_v10, %v372_v7  ;;  %v381_v22 = vld [vmem:[#allocation2 + $0x348] sm:$0xff]  ;;  %v380_v23 = vld [vmem:[#allocation2 + $0x340] sm:$0xff] }
  0x62   :  { %1902 = vmatprep.subr.bf16.mxu0 %v1901_v57  ;;  %v1927_v55 = vpack.c.bf16 %v369_v53, %v366_v52  ;;  %v323_v57 = vld [vmem:[#allocation2 + $0x178] sm:$0xff]  ;;  %v378_v19 = vld [vmem:[#allocation2 + $0x330] sm:$0xff]  ;;  %v389_v33 = vld [vmem:[#allocation2 + $0x388] sm:$0xff] }
  0x63   :  { %1972 = vmatpush3.bf16.msra.mxu1 %v1971_v46  ;;  %v371_v46 = vld [vmem:[#allocation2 + $0x2f8] sm:$0xff]  ;;  %v1991_v58 = vpack.c.bf16 %v323_v57, %v320_v56  ;;  %v1935_v27 = vpack.c.bf16 %v381_v22, %v378_v19  ;;  %v386_v32 = vld [vmem:[#allocation2 + $0x370] sm:$0xff]  ;;  %v393_v40 = vld [vmem:[#allocation2 + $0x3a8] sm:$0xff] }
  0x64   :  { %1974 = vmatprep.subr.bf16.mxu1 %v1973_v54  ;;  %v1989_v54 = vpack.c.bf16 %v371_v46, %v368_v50  ;;  %v387_v31 = vld [vmem:[#allocation2 + $0x378] sm:$0xff]  ;;  %v2000_v37 = vpack.c.bf16 %v389_v33, %v386_v32  ;;  %v390_v38 = vld [vmem:[#allocation2 + $0x390] sm:$0xff]  ;;  %v397_v43 = vld [vmem:[#allocation2 + $0x3c8] sm:$0xff] }
  0x65   :  { %1904 = vmatpush1.bf16.msra.mxu0 %v1903_v1  ;;  %v400_v44 = vld [vmem:[#allocation2 + $0x3e0] sm:$0xff]  ;;  %v399_v46 = vld [vmem:[#allocation2 + $0x3d8] sm:$0xff]  ;;  %v398_v52 = vld [vmem:[#allocation2 + $0x3d0] sm:$0xff] }
  0x66   :  { %1906 = vmatprep.subr.bf16.mxu0 %v1905_v6  ;;  %v396_v49 = vld [vmem:[#allocation2 + $0x3c0] sm:$0xff]  ;;  %v401_v53 = vld [vmem:[#allocation2 + $0x3e8] sm:$0xff]  ;;  %v406_v56 = vld [vmem:[#allocation2 + $0x410] sm:$0xff] }
  0x67   :  { %1976 = vmatpush3.bf16.msra.mxu1 %v1975_v63  ;;  %v2578_v63 = vshrl.u32 %v113_v62, 7  ;;  %v1947_v57 = vpack.c.bf16 %v399_v46, %v396_v49  ;;  %v402_v59 = vld [vmem:[#allocation2 + $0x3f0] sm:$0xff]  ;;  %v404_v62 = vld [vmem:[#allocation2 + $0x400] sm:$0xff]  ;;  %v747_v46 = vld [vmem:[#allocation5 + $0xc8] sm:$0xff] }
  0x68   :  { %1978 = vmatprep.subr.bf16.mxu1 %v1977_v3  ;;  %v408_v10 = vld [vmem:[#allocation2 + $0x420] sm:$0xff]  ;;  %v414_v19 = vld [vmem:[#allocation2 + $0x450] sm:$0xff] }
  0x69   :  { %1908 = vmatpush1.bf16.msra.mxu0 %v1907_v13  ;;  %v2581_v1 = vsub.s32 0, %v2578_v63  ;;  %v2589_v3 = vsub.s32 1, %v2578_v63  ;;  %v2603_v7 = vsub.s32 2, %v2578_v63  ;;  %v416_v22 = vld [vmem:[#allocation2 + $0x460] sm:$0xff]  ;;  %v732_v32 = vld [vmem:[#allocation5 + $0x50] sm:$0xff] }
  0x6a   :  { %1910 = vmatprep.subr.bf16.mxu0 %v1909_v18 }
  0x6b   :  { %1980 = vmatpush3.bf16.msra.mxu1 %v1979_v12  ;;  %v116_v4 = vrot.slane %v2586_v2, %v2581_v1  ;;  %v120_v5 = vrot.slane %v2586_v2, %v2589_v3  ;;  %v377_v12 = vld [vmem:[#allocation2 + $0x328] sm:$0xff] }
  0x6c   :  { %1982 = vmatprep.subr.bf16.mxu1 %v1981_v15  ;;  %v382_v15 = vld [vmem:[#allocation2 + $0x350] sm:$0xff]  ;;  %v1994_v18 = vpack.c.bf16 %v377_v12, %v374_v11  ;;  %v411_v12 = vld [vmem:[#allocation2 + $0x438] sm:$0xff] }
  0x6d   :  { %1912 = vmatpush1.bf16.msra.mxu0 %v1911_v25  ;;  %v1933_v21 = vpack.c.bf16 %v382_v15, %v379_v14  ;;  %v385_v25 = vld [vmem:[#allocation2 + $0x368] sm:$0xff]  ;;  %v415_v15 = vld [vmem:[#allocation2 + $0x458] sm:$0xff]  ;;  %v1955_v63 = vpack.c.bf16 %v411_v12, %v408_v10 }
  0x6e   :  { %1914 = vmatprep.subr.bf16.mxu0 %v1913_v29  ;;  %v384_v29 = vld [vmem:[#allocation2 + $0x360] sm:$0xff]  ;;  %v413_v14 = vld [vmem:[#allocation2 + $0x448] sm:$0xff]  ;;  %v761_v10 = vld [vmem:[#allocation5 + $0x138] sm:$0xff] }
  0x6f   :  { %1984 = vmatpush3.bf16.msra.mxu1 %v1983_v24  ;;  %v383_v24 = vld [vmem:[#allocation2 + $0x358] sm:$0xff] }
  0x70   :  { %1986 = vmatprep.subr.bf16.mxu1 %v1985_v26  ;;  %v388_v26 = vld [vmem:[#allocation2 + $0x380] sm:$0xff]  ;;  %v1997_v28 = vpack.c.bf16 %v383_v24, %v380_v23  ;;  %v419_v23 = vld [vmem:[#allocation2 + $0x478] sm:$0xff]  ;;  %v723_v24 = vld [vmem:[#allocation5 + $0x8] sm:$0xff] }
  0x71   :  { %1916 = vmatpush1.bf16.msra.mxu0 %v1915_v35  ;;  %v1937_v30 = vpack.c.bf16 %v388_v26, %v385_v25  ;;  %v394_v35 = vld [vmem:[#allocation2 + $0x3b0] sm:$0xff]  ;;  %v726_v25 = vld [vmem:[#allocation5 + $0x20] sm:$0xff]  ;;  %v765_v12 = vld [vmem:[#allocation5 + $0x158] sm:$0xff] }
  0x72   :  { %1918 = vmatprep.subr.bf16.mxu0 %v1917_v36  ;;  %v1939_v36 = vpack.c.bf16 %v387_v31, %v384_v29  ;;  %v722_v29 = vld [vmem:[#allocation5] sm:$0xff]  ;;  %v729_v31 = vld [vmem:[#allocation5 + $0x38] sm:$0xff] }
  0x73   :  { %1988 = vmatpush3.bf16.msra.mxu1 %v1987_v34  ;;  %v391_v34 = vld [vmem:[#allocation2 + $0x398] sm:$0xff] }
  0x74   :  { %1990 = vmatprep.subr.bf16.mxu1 %v1989_v54  ;;  %v1941_v39 = vpack.c.bf16 %v394_v35, %v391_v34  ;;  %v2021_v35 = vpack.c.bf16 %v732_v32, %v729_v31  ;;  %v781_v31 = vld [vmem:[#allocation5 + $0x1d8] sm:$0xff] }
  0x75   :  { %1920 = vmatpush1.bf16.msra.mxu0 %v1919_v41  ;;  %v392_v41 = vld [vmem:[#allocation2 + $0x3a0] sm:$0xff] }
  0x76   :  { %1922 = vmatprep.subr.bf16.mxu0 %v1921_v42  ;;  %v395_v42 = vld [vmem:[#allocation2 + $0x3b8] sm:$0xff] }
  0x77   :  { %1992 = vmatpush3.bf16.msra.mxu1 %v1991_v58  ;;  %v2003_v47 = vpack.c.bf16 %v395_v42, %v392_v41  ;;  %v2006_v58 = vpack.c.bf16 %v401_v53, %v398_v52  ;;  %v734_v42 = vld [vmem:[#allocation5 + $0x60] sm:$0xff] }
  0x78   :  { %1993 = vmatprep.subr.bf16.mxu1 %v2372_v48  ;;  %v750_v52 = vld [vmem:[#allocation5 + $0xe0] sm:$0xff] }
  0x79   :  { %1924 = vmatpush1.bf16.msra.mxu0 %v1923_v45  ;;  %v1943_v45 = vpack.c.bf16 %v393_v40, %v390_v38  ;;  %v735_v38 = vld [vmem:[#allocation5 + $0x68] sm:$0xff] }
  0x7a   :  { %1926 = vmatprep.subr.bf16.mxu0 %v1925_v51  ;;  %v1945_v51 = vpack.c.bf16 %v400_v44, %v397_v43  ;;  %v737_v43 = vld [vmem:[#allocation5 + $0x78] sm:$0xff] }
  0x7b   :  { %v741_v44 = vld [vmem:[#allocation5 + $0x98] sm:$0xff] }
  0x7d   :  { %1928 = vmatpush1.bf16.msra.mxu0 %v1927_v55  ;;  %v403_v55 = vld [vmem:[#allocation2 + $0x3f8] sm:$0xff] }
  0x7e   :  { %1930 = vmatprep.subr.bf16.mxu0 %v1929_v61  ;;  %v1949_v60 = vpack.c.bf16 %v406_v56, %v403_v55  ;;  %v405_v61 = vld [vmem:[#allocation2 + $0x408] sm:$0xff]  ;;  %v746_v55 = vld [vmem:[#allocation5 + $0xc0] sm:$0xff]  ;;  %v749_v56 = vld [vmem:[#allocation5 + $0xd8] sm:$0xff] }
 0x11d   :  { %v198_v6 = vpop.f32.mrb[0].mxu1 }
 0x11e   :  { %v199_v8 = vadd.f32 %v198_v6, %v116_v4  ;;  %v200_v9 = vpop.f32.mrb[1].mxu1  ;;  %v407_v4 = vld [vmem:[#allocation2 + $0x418] sm:$0xff]  ;;  %v412_v6 = vld [vmem:[#allocation2 + $0x440] sm:$0xff] }
 0x11f   :  { %v201_v13 = vadd.f32 %v200_v9, %v120_v5  ;;  %v409_v5 = vld [vmem:[#allocation2 + $0x428] sm:$0xff]  ;;  %v2009_v9 = vpack.c.bf16 %v407_v4, %v404_v62 }
 0x120   :  { %v273_v20 = vmax.f32 %v199_v8, 0.0  ;;  %v1951_v8 = vpack.c.bf16 %v405_v61, %v402_v59  ;;  %v1953_v11 = vpack.c.bf16 %v412_v6, %v409_v5  ;;  %v2035_v59 = vpack.c.bf16 %v749_v56, %v746_v55  ;;  %v752_v61 = vld [vmem:[#allocation5 + $0xf0] sm:$0xff]  ;;  %v755_v62 = vld [vmem:[#allocation5 + $0x108] sm:$0xff]  ;;  %v762_v5 = vld [vmem:[#allocation5 + $0x140] sm:$0xff] }
 0x121   :  { %v274_v16 = vmax.f32 %v201_v13, 0.0  ;;  %v410_v13 = vld [vmem:[#allocation2 + $0x430] sm:$0xff]  ;;  %v759_v4 = vld [vmem:[#allocation5 + $0x128] sm:$0xff]  ;;  %v2039_v6 = vpack.c.bf16 %v755_v62, %v752_v61  ;;  %v793_v56 = vld [vmem:[#allocation5 + $0x238] sm:$0xff] }
 0x122   :  { %v742_v61 = vld [vmem:[#allocation5 + $0xa0] sm:$0xff]  ;;  %v745_v62 = vld [vmem:[#allocation5 + $0xb8] sm:$0xff] }
 0x123   :  { %501 = vmatprep.mubr.f32.mxu0 %v274_v16  ;;  %643 = vmatprep.mubr.f32.mxu1 %v274_v16  ;;  %v418_v16 = vld [vmem:[#allocation2 + $0x470] sm:$0xff] }
 0x124   :  { %502 = vmatmul.mubr.f32.vlgmr.msra.gmra.mrb[0].mxu0 %v273_v20  ;;  %644 = vmatmul.mubr.f32.vlgmr.msra.gmra.mrb[4].mxu1 %v273_v20  ;;  %v1957_v20 = vpack.c.bf16 %v418_v16, %v415_v15  ;;  %v764_v15 = vld [vmem:[#allocation5 + $0x150] sm:$0xff]  ;;  %v767_v16 = vld [vmem:[#allocation5 + $0x168] sm:$0xff] }
 0x125   :  { %1932 = vmatpush1.bf16.msra.mxu0 %v1931_v17  ;;  %1995 = vmatpush3.bf16.msra.mxu1 %v1994_v18  ;;  %v124_v17 = vrot.slane %v2586_v2, %v2603_v7  ;;  %v2012_v18 = vpack.c.bf16 %v413_v14, %v410_v13  ;;  %v2017_v2 = vpack.c.bf16 %v726_v25, %v723_v24  ;;  %v768_v13 = vld [vmem:[#allocation5 + $0x170] sm:$0xff] }
 0x126   :  { %1934 = vmatprep.subr.bf16.mxu0 %v1933_v21  ;;  %1996 = vmatprep.subr.bf16.mxu1 %v2372_v48  ;;  %v417_v21 = vld [vmem:[#allocation2 + $0x468] sm:$0xff]  ;;  %v2045_v14 = vpack.c.bf16 %v768_v13, %v765_v12  ;;  %v797_v12 = vld [vmem:[#allocation5 + $0x258] sm:$0xff] }
 0x127   :  { %572 = vmatprep.mubr.f32.mxu0 %v2371_v0  ;;  %1729 = vmatprep.mubr.msk.f32.mxu1 %vm2373_vm1, %v2371_v0 }
 0x129   :  { %1936 = vmatpush1.bf16.msra.mxu0 %v1935_v27  ;;  %1998 = vmatpush3.bf16.msra.mxu1 %v1997_v28  ;;  %v1959_v27 = vpack.c.bf16 %v417_v21, %v414_v19  ;;  %v2015_v28 = vpack.c.bf16 %v419_v23, %v416_v22  ;;  %v772_v19 = vld [vmem:[#allocation5 + $0x190] sm:$0xff]  ;;  %v775_v21 = vld [vmem:[#allocation5 + $0x1a8] sm:$0xff]  ;;  %v770_v22 = vld [vmem:[#allocation5 + $0x180] sm:$0xff] }
 0x12a   :  { %1938 = vmatprep.subr.bf16.mxu0 %v1937_v30  ;;  %1999 = vmatprep.subr.bf16.mxu1 %v2372_v48  ;;  %v725_v30 = vld [vmem:[#allocation5 + $0x18] sm:$0xff]  ;;  %v2113_v24 = vpack.c.bf16 %v775_v21, %v772_v19 }
 0x12b   :  { %v2019_v34 = vpack.c.bf16 %v725_v30, %v722_v29  ;;  %v773_v23 = vld [vmem:[#allocation5 + $0x198] sm:$0xff]  ;;  %v780_v29 = vld [vmem:[#allocation5 + $0x1d0] sm:$0xff]  ;;  %v778_v30 = vld [vmem:[#allocation5 + $0x1c0] sm:$0xff] }
 0x12c   :  { %v2051_v25 = vpack.c.bf16 %v773_v23, %v770_v22  ;;  %v805_v19 = vld [vmem:[#allocation5 + $0x298] sm:$0xff]  ;;  %v800_v22 = vld [vmem:[#allocation5 + $0x270] sm:$0xff]  ;;  %v803_v23 = vld [vmem:[#allocation5 + $0x288] sm:$0xff] }
 0x12d   :  { %1940 = vmatpush1.bf16.msra.mxu0 %v1939_v36  ;;  %2001 = vmatpush3.bf16.msra.mxu1 %v2000_v37  ;;  %v269_v50 = vpop.f32.mrb[2].mxu1  ;;  %v728_v36 = vld [vmem:[#allocation5 + $0x30] sm:$0xff]  ;;  %v731_v37 = vld [vmem:[#allocation5 + $0x48] sm:$0xff] }
 0x12e   :  { %1942 = vmatprep.subr.bf16.mxu0 %v1941_v39  ;;  %2002 = vmatprep.subr.bf16.mxu1 %v2372_v48  ;;  %v1696_v54 = vpop.f32.mrb[3].mxu1  ;;  %v270_v26 = vadd.f32 %v269_v50, %v124_v17  ;;  %v738_v39 = vld [vmem:[#allocation5 + $0x80] sm:$0xff]  ;;  %v2023_v40 = vpack.c.bf16 %v731_v37, %v728_v36  ;;  %v740_v50 = vld [vmem:[#allocation5 + $0x90] sm:$0xff]  ;;  %v2047_v17 = vpack.c.bf16 %v767_v16, %v764_v15  ;;  %v751_v16 = vld [vmem:[#allocation5 + $0xe8] sm:$0xff] }
 0x12f   :  { %v2025_v41 = vpack.c.bf16 %v738_v39, %v735_v38  ;;  %v2033_v54 = vpack.c.bf16 %v750_v52, %v747_v46  ;;  %v730_v36 = vld [vmem:[#allocation5 + $0x40] sm:$0xff]  ;;  %v733_v38 = vld [vmem:[#allocation5 + $0x58] sm:$0xff]  ;;  %v783_v39 = vld [vmem:[#allocation5 + $0x1e8] sm:$0xff] }
 0x130   :  { %v275_v33 = vmax.f32 %v270_v26, 0.0  ;;  %v724_v26 = vld [vmem:[#allocation5 + $0x10] sm:$0xff]  ;;  %v789_v46 = vld [vmem:[#allocation5 + $0x218] sm:$0xff] }
 0x131   :  { %1944 = vmatpush1.bf16.msra.mxu0 %v1943_v45  ;;  %2004 = vmatpush3.bf16.msra.mxu1 %v2003_v47  ;;  %v744_v45 = vld [vmem:[#allocation5 + $0xb0] sm:$0xff]  ;;  %v2027_v47 = vpack.c.bf16 %v737_v43, %v734_v42 }
 0x132   :  { %1946 = vmatprep.subr.bf16.mxu0 %v1945_v51  ;;  %2005 = vmatprep.subr.bf16.mxu1 %v2372_v48  ;;  %v2029_v49 = vpack.c.bf16 %v744_v45, %v741_v44  ;;  %v743_v51 = vld [vmem:[#allocation5 + $0xa8] sm:$0xff]  ;;  %v784_v43 = vld [vmem:[#allocation5 + $0x1f0] sm:$0xff]  ;;  %v782_v45 = vld [vmem:[#allocation5 + $0x1e0] sm:$0xff] }
 0x133   :  { %v2031_v53 = vpack.c.bf16 %v743_v51, %v740_v50  ;;  %v787_v44 = vld [vmem:[#allocation5 + $0x208] sm:$0xff]  ;;  %v736_v50 = vld [vmem:[#allocation5 + $0x70] sm:$0xff] }
 0x134   :  { %v739_v51 = vld [vmem:[#allocation5 + $0x88] sm:$0xff]  ;;  %v792_v52 = vld [vmem:[#allocation5 + $0x230] sm:$0xff] }
 0x135   :  { %1948 = vmatpush1.bf16.msra.mxu0 %v1947_v57  ;;  %2007 = vmatpush3.bf16.msra.mxu1 %v2006_v58  ;;  %v753_v57 = vld [vmem:[#allocation5 + $0xf8] sm:$0xff]  ;;  %v756_v58 = vld [vmem:[#allocation5 + $0x110] sm:$0xff]  ;;  %v2123_v55 = vpack.c.bf16 %v739_v51, %v736_v50 }
 0x136   :  { %1950 = vmatprep.subr.bf16.mxu0 %v1949_v60  ;;  %2008 = vmatprep.subr.bf16.mxu1 %v2372_v48  ;;  %v2037_v60 = vpack.c.bf16 %v756_v58, %v753_v57  ;;  %v788_v57 = vld [vmem:[#allocation5 + $0x210] sm:$0xff]  ;;  %v791_v58 = vld [vmem:[#allocation5 + $0x228] sm:$0xff] }
 0x137   :  { %v748_v15 = vld [vmem:[#allocation5 + $0xd0] sm:$0xff] }
 0x138   :  { %v2131_v21 = vpack.c.bf16 %v751_v16, %v748_v15  ;;  %v820_v15 = vld [vmem:[#allocation5 + $0x310] sm:$0xff]  ;;  %v823_v16 = vld [vmem:[#allocation5 + $0x328] sm:$0xff] }
 0x139   :  { %1952 = vmatpush1.bf16.msra.mxu0 %v1951_v8  ;;  %2010 = vmatpush3.bf16.msra.mxu1 %v2009_v9  ;;  %v2041_v8 = vpack.c.bf16 %v762_v5, %v759_v4  ;;  %v758_v9 = vld [vmem:[#allocation5 + $0x120] sm:$0xff]  ;;  %v795_v4 = vld [vmem:[#allocation5 + $0x248] sm:$0xff] }
 0x13a   :  { %1954 = vmatprep.subr.bf16.mxu0 %v1953_v11  ;;  %2011 = vmatprep.subr.bf16.mxu1 %v2372_v48  ;;  %v2043_v11 = vpack.c.bf16 %v761_v10, %v758_v9  ;;  %v798_v5 = vld [vmem:[#allocation5 + $0x260] sm:$0xff]  ;;  %v2063_v9 = vpack.c.bf16 %v791_v58, %v788_v57  ;;  %v2127_v10 = vpack.c.bf16 %v745_v62, %v742_v61 }
 0x13b   :  { %v2065_v13 = vpack.c.bf16 %v798_v5, %v795_v4 }
 0x13d   :  { %1956 = vmatpush1.bf16.msra.mxu0 %v1955_v63  ;;  %2013 = vmatpush3.bf16.msra.mxu1 %v2012_v18  ;;  %v771_v63 = vld [vmem:[#allocation5 + $0x188] sm:$0xff]  ;;  %v774_v18 = vld [vmem:[#allocation5 + $0x1a0] sm:$0xff] }
 0x13e   :  { %1958 = vmatprep.subr.bf16.mxu0 %v1957_v20  ;;  %2014 = vmatprep.subr.bf16.mxu1 %v2372_v48  ;;  %v2049_v20 = vpack.c.bf16 %v774_v18, %v771_v63  ;;  %v804_v63 = vld [vmem:[#allocation5 + $0x290] sm:$0xff]  ;;  %v802_v18 = vld [vmem:[#allocation5 + $0x280] sm:$0xff] }
 0x141   :  { %1960 = vmatpush1.bf16.msra.mxu0 %v1959_v27  ;;  %2016 = vmatpush3.bf16.msra.mxu1 %v2015_v28  ;;  %v727_v27 = vld [vmem:[#allocation5 + $0x28] sm:$0xff]  ;;  %v777_v28 = vld [vmem:[#allocation5 + $0x1b8] sm:$0xff] }
 0x142   :  { %2018 = vmatprep.subr.bf16.mxu1 %v2017_v2  ;;  %v2115_v2 = vpack.c.bf16 %v727_v27, %v724_v26  ;;  %2114 = vmatprep.subr.bf16.mxu0 %v2113_v24  ;;  %v2053_v32 = vpack.c.bf16 %v780_v29, %v777_v28  ;;  %v754_v26 = vld [vmem:[#allocation5 + $0x100] sm:$0xff]  ;;  %v757_v27 = vld [vmem:[#allocation5 + $0x118] sm:$0xff]  ;;  %v807_v28 = vld [vmem:[#allocation5 + $0x2a8] sm:$0xff] }
 0x143   :  { %v808_v29 = vld [vmem:[#allocation5 + $0x2b0] sm:$0xff] }
 0x144   :  { %573 = vmatmul.mubr.f32.vlgmr.msra.gmra.mrb[0].mxu0 %v275_v33  ;;  %1730 = vmatmul.mubr.f32.vlgmr.msra.gmra.mrb[6].mxu1 %v275_v33  ;;  %v2117_v33 = vpack.c.bf16 %v781_v31, %v778_v30  ;;  %v811_v30 = vld [vmem:[#allocation5 + $0x2c8] sm:$0xff]  ;;  %v2071_v31 = vpack.c.bf16 %v803_v23, %v800_v22  ;;  %v824_v22 = vld [vmem:[#allocation5 + $0x330] sm:$0xff] }
 0x145   :  { %2020 = vmatpush1.bf16.msra.mxu1 %v2019_v34  ;;  %v776_v34 = vld [vmem:[#allocation5 + $0x1b0] sm:$0xff]  ;;  %2116 = vmatpush3.bf16.msra.mxu0 %v2115_v2  ;;  %v810_v2 = vld [vmem:[#allocation5 + $0x2c0] sm:$0xff] }
 0x146   :  { %2022 = vmatprep.subr.bf16.mxu1 %v2021_v35  ;;  %v779_v35 = vld [vmem:[#allocation5 + $0x1c8] sm:$0xff]  ;;  %2118 = vmatprep.subr.bf16.mxu0 %v2117_v33  ;;  %v806_v33 = vld [vmem:[#allocation5 + $0x2a0] sm:$0xff] }
 0x147   :  { %v2055_v37 = vpack.c.bf16 %v779_v35, %v776_v34  ;;  %v2073_v34 = vpack.c.bf16 %v810_v2, %v807_v28  ;;  %v2137_v35 = vpack.c.bf16 %v811_v30, %v808_v29  ;;  %v831_v28 = vld [vmem:[#allocation5 + $0x368] sm:$0xff]  ;;  %v834_v2 = vld [vmem:[#allocation5 + $0x380] sm:$0xff] }
 0x149   :  { %2024 = vmatpush1.bf16.msra.mxu1 %v2023_v40  ;;  %v786_v40 = vld [vmem:[#allocation5 + $0x200] sm:$0xff] }
 0x14a   :  { %2026 = vmatprep.subr.bf16.mxu1 %v2025_v41  ;;  %v2119_v41 = vpack.c.bf16 %v733_v38, %v730_v36  ;;  %v2057_v42 = vpack.c.bf16 %v786_v40, %v783_v39  ;;  %v809_v36 = vld [vmem:[#allocation5 + $0x2b8] sm:$0xff]  ;;  %v763_v38 = vld [vmem:[#allocation5 + $0x148] sm:$0xff] }
 0x14b   :  { %v2075_v39 = vpack.c.bf16 %v809_v36, %v806_v33  ;;  %v833_v33 = vld [vmem:[#allocation5 + $0x378] sm:$0xff] }
 0x14c   :  { %2120 = vmatpush3.bf16.msra.mxu0 %v2119_v41  ;;  %v813_v41 = vld [vmem:[#allocation5 + $0x2d8] sm:$0xff] }
 0x14d   :  { %2028 = vmatpush1.bf16.msra.mxu1 %v2027_v47  ;;  %v2121_v47 = vpack.c.bf16 %v787_v44, %v784_v43  ;;  %v814_v43 = vld [vmem:[#allocation5 + $0x2e0] sm:$0xff]  ;;  %v837_v36 = vld [vmem:[#allocation5 + $0x398] sm:$0xff] }
 0x14e   :  { %2030 = vmatprep.subr.bf16.mxu1 %v2029_v49  ;;  %v785_v49 = vld [vmem:[#allocation5 + $0x1f8] sm:$0xff] }
 0x14f   :  { %2122 = vmatprep.subr.bf16.mxu0 %v2121_v47  ;;  %v812_v47 = vld [vmem:[#allocation5 + $0x2d0] sm:$0xff] }
 0x150   :  { %2124 = vmatpush3.bf16.msra.mxu0 %v2123_v55  ;;  %v822_v55 = vld [vmem:[#allocation5 + $0x320] sm:$0xff] }
 0x151   :  { %2032 = vmatpush1.bf16.msra.mxu1 %v2031_v53  ;;  %v790_v53 = vld [vmem:[#allocation5 + $0x220] sm:$0xff] }
 0x152   :  { %2034 = vmatprep.subr.bf16.mxu1 %v2033_v54  ;;  %v2059_v54 = vpack.c.bf16 %v785_v49, %v782_v45  ;;  %v817_v45 = vld [vmem:[#allocation5 + $0x2f8] sm:$0xff]  ;;  %v815_v49 = vld [vmem:[#allocation5 + $0x2e8] sm:$0xff] }
 0x153   :  { %v2141_v50 = vpack.c.bf16 %v817_v45, %v814_v43  ;;  %v2079_v51 = vpack.c.bf16 %v815_v49, %v812_v47  ;;  %v838_v43 = vld [vmem:[#allocation5 + $0x3a0] sm:$0xff]  ;;  %v843_v45 = vld [vmem:[#allocation5 + $0x3c8] sm:$0xff] }
 0x154   :  { %v846_v47 = vld [vmem:[#allocation5 + $0x3e0] sm:$0xff] }
 0x155   :  { %2036 = vmatpush1.bf16.msra.mxu1 %v2035_v59  ;;  %v2061_v59 = vpack.c.bf16 %v792_v52, %v789_v46  ;;  %v766_v46 = vld [vmem:[#allocation5 + $0x160] sm:$0xff]  ;;  %v769_v52 = vld [vmem:[#allocation5 + $0x178] sm:$0xff] }
 0x156   :  { %2038 = vmatprep.subr.bf16.mxu1 %v2037_v60  ;;  %v2125_v60 = vpack.c.bf16 %v793_v56, %v790_v53  ;;  %v2143_v53 = vpack.c.bf16 %v769_v52, %v766_v46  ;;  %v2097_v46 = vpack.c.bf16 %v846_v47, %v843_v45  ;;  %v845_v52 = vld [vmem:[#allocation5 + $0x3d8] sm:$0xff]  ;;  %v1189_v47 = vld [vmem:[#allocation7 + $0xa8] sm:$0xff] }
 0x158   :  { %2126 = vmatprep.subr.bf16.mxu0 %v2125_v60  ;;  %v420_v60 = vld [vmem:[%s2733_s5] sm:$0x7] }
 0x159   :  { %2040 = vmatpush1.bf16.msra.mxu1 %v2039_v6  ;;  %v796_v6 = vld [vmem:[#allocation5 + $0x250] sm:$0xff]  ;;  %2128 = vmatpush3.bf16.msra.mxu0 %v2127_v10  ;;  %v433_v61 = vrot.slane %v420_v60, %v2603_v7  ;;  %v425_v62 = vrot.slane %v420_v60, %v2581_v1  ;;  %v429_v4 = vrot.slane %v420_v60, %v2589_v3 }
 0x15a   :  { %2042 = vmatprep.subr.bf16.mxu1 %v2041_v8  ;;  %v799_v8 = vld [vmem:[#allocation5 + $0x268] sm:$0xff] }
 0x15d   :  { %2044 = vmatpush1.bf16.msra.mxu1 %v2043_v11  ;;  %v794_v11 = vld [vmem:[#allocation5 + $0x240] sm:$0xff] }
 0x15e   :  { %2046 = vmatprep.subr.bf16.mxu1 %v2045_v14  ;;  %v2129_v14 = vpack.c.bf16 %v799_v8, %v796_v6 }
 0x160   :  { %2130 = vmatprep.subr.bf16.mxu0 %v2129_v14  ;;  %v821_v14 = vld [vmem:[#allocation5 + $0x318] sm:$0xff] }
 0x161   :  { %2048 = vmatpush1.bf16.msra.mxu1 %v2047_v17  ;;  %v801_v17 = vld [vmem:[#allocation5 + $0x278] sm:$0xff]  ;;  %2132 = vmatpush3.bf16.msra.mxu0 %v2131_v21  ;;  %v2146_v21 = vpack.c.bf16 %v823_v16, %v820_v15  ;;  %v859_v15 = vld [vmem:[#allocation5 + $0x448] sm:$0xff] }
 0x162   :  { %2050 = vmatprep.subr.bf16.mxu1 %v2049_v20  ;;  %v2067_v20 = vpack.c.bf16 %v797_v12, %v794_v11  ;;  %v2069_v24 = vpack.c.bf16 %v804_v63, %v801_v17  ;;  %v825_v63 = vld [vmem:[#allocation5 + $0x338] sm:$0xff] }
 0x163   :  { %v861_v16 = vld [vmem:[#allocation5 + $0x458] sm:$0xff] }
 0x165   :  { %2052 = vmatpush1.bf16.msra.mxu1 %v2051_v25  ;;  %v2133_v25 = vpack.c.bf16 %v805_v19, %v802_v18  ;;  %v828_v18 = vld [vmem:[#allocation5 + $0x350] sm:$0xff] }
 0x166   :  { %2054 = vmatprep.subr.bf16.mxu1 %v2053_v32  ;;  %v2135_v32 = vpack.c.bf16 %v757_v27, %v754_v26  ;;  %v826_v26 = vld [vmem:[#allocation5 + $0x340] sm:$0xff]  ;;  %v829_v27 = vld [vmem:[#allocation5 + $0x358] sm:$0xff] }
 0x167   :  { %2134 = vmatprep.subr.bf16.mxu0 %v2133_v25  ;;  %v827_v25 = vld [vmem:[#allocation5 + $0x348] sm:$0xff]  ;;  %v2149_v30 = vpack.c.bf16 %v829_v27, %v826_v26  ;;  %v1200_v27 = vld [vmem:[#allocation7 + $0x100] sm:$0xff] }
 0x168   :  { %2136 = vmatpush3.bf16.msra.mxu0 %v2135_v32  ;;  %v2087_v29 = vpack.c.bf16 %v827_v25, %v824_v22  ;;  %v2089_v32 = vpack.c.bf16 %v834_v2, %v831_v28  ;;  %v862_v22 = vld [vmem:[#allocation5 + $0x460] sm:$0xff]  ;;  %v1201_v28 = vld [vmem:[#allocation7 + $0x108] sm:$0xff] }
 0x169   :  { %2056 = vmatpush1.bf16.msra.mxu1 %v2055_v37  ;;  %v760_v37 = vld [vmem:[#allocation5 + $0x130] sm:$0xff]  ;;  %2138 = vmatprep.subr.bf16.mxu0 %v2137_v35  ;;  %v835_v35 = vld [vmem:[#allocation5 + $0x388] sm:$0xff]  ;;  %v1184_v2 = vld [vmem:[#allocation7 + $0x80] sm:$0xff] }
 0x16a   :  { %2058 = vmatprep.subr.bf16.mxu1 %v2057_v42  ;;  %v2139_v40 = vpack.c.bf16 %v763_v38, %v760_v37  ;;  %v816_v42 = vld [vmem:[#allocation5 + $0x2f0] sm:$0xff] }
 0x16b   :  { %v2077_v44 = vpack.c.bf16 %v816_v42, %v813_v41  ;;  %v840_v37 = vld [vmem:[#allocation5 + $0x3b0] sm:$0xff]  ;;  %v839_v42 = vld [vmem:[#allocation5 + $0x3a8] sm:$0xff] }
 0x16c   :  { %2140 = vmatpush3.bf16.msra.mxu0 %v2139_v40  ;;  %v836_v40 = vld [vmem:[#allocation5 + $0x390] sm:$0xff]  ;;  %v2093_v41 = vpack.c.bf16 %v840_v37, %v837_v36  ;;  %v1203_v36 = vld [vmem:[#allocation7 + $0x118] sm:$0xff] }
 0x16d   :  { %2060 = vmatpush1.bf16.msra.mxu1 %v2059_v54  ;;  %2142 = vmatprep.subr.bf16.mxu0 %v2141_v50  ;;  %v819_v54 = vld [vmem:[#allocation5 + $0x308] sm:$0xff]  ;;  %v2095_v49 = vpack.c.bf16 %v839_v42, %v836_v40  ;;  %v1186_v37 = vld [vmem:[#allocation7 + $0x90] sm:$0xff]  ;;  %v1171_v40 = vld [vmem:[#allocation7 + $0x18] sm:$0xff] }
 0x16e   :  { %2062 = vmatprep.subr.bf16.mxu1 %v2061_v59  ;;  %v2081_v56 = vpack.c.bf16 %v822_v55, %v819_v54  ;;  %v847_v54 = vld [vmem:[#allocation5 + $0x3e8] sm:$0xff]  ;;  %v849_v55 = vld [vmem:[#allocation5 + $0x3f8] sm:$0xff]  ;;  %v1204_v42 = vld [vmem:[#allocation7 + $0x120] sm:$0xff] }
 0x170   :  { %2144 = vmatpush3.bf16.msra.mxu0 %v2143_v53  ;;  %v844_v53 = vld [vmem:[#allocation5 + $0x3d0] sm:$0xff] }
 0x171   :  { %2064 = vmatpush1.bf16.msra.mxu1 %v2063_v9  ;;  %2145 = vmatprep.subr.bf16.mxu0 %v2372_v48  ;;  %v818_v9 = vld [vmem:[#allocation5 + $0x300] sm:$0xff] }
 0x172   :  { %2066 = vmatprep.subr.bf16.mxu1 %v2065_v13 }
 0x175   :  { %2068 = vmatpush1.bf16.msra.mxu1 %v2067_v20  ;;  %v2083_v20 = vpack.c.bf16 %v821_v14, %v818_v9  ;;  %v856_v14 = vld [vmem:[#allocation5 + $0x430] sm:$0xff] }
 0x176   :  { %2070 = vmatprep.subr.bf16.mxu1 %v2069_v24  ;;  %v2085_v24 = vpack.c.bf16 %v828_v18, %v825_v63  ;;  %v2164_v18 = vpack.c.bf16 %v859_v15, %v856_v14  ;;  %v1195_v14 = vld [vmem:[#allocation7 + $0xd8] sm:$0xff]  ;;  %v1210_v15 = vld [vmem:[#allocation7 + $0x150] sm:$0xff] }
 0x179   :  { %2072 = vmatpush1.bf16.msra.mxu1 %v2071_v31  ;;  %v830_v31 = vld [vmem:[#allocation5 + $0x360] sm:$0xff] }
 0x17a   :  { %2074 = vmatprep.subr.bf16.mxu1 %v2073_v34  ;;  %v832_v34 = vld [vmem:[#allocation5 + $0x370] sm:$0xff]  ;;  %v2091_v38 = vpack.c.bf16 %v833_v33, %v830_v31  ;;  %v1168_v31 = vld [vmem:[#allocation7] sm:$0xff] }
 0x17d   :  { %2076 = vmatpush1.bf16.msra.mxu1 %v2075_v39  ;;  %v2152_v39 = vpack.c.bf16 %v835_v35, %v832_v34  ;;  %v1202_v35 = vld [vmem:[#allocation7 + $0x110] sm:$0xff] }
 0x17e   :  { %2078 = vmatprep.subr.bf16.mxu1 %v2077_v44  ;;  %v841_v44 = vld [vmem:[#allocation5 + $0x3b8] sm:$0xff] }
 0x17f   :  { %v2155_v50 = vpack.c.bf16 %v841_v44, %v838_v43  ;;  %v1205_v43 = vld [vmem:[#allocation7 + $0x128] sm:$0xff]  ;;  %v1188_v44 = vld [vmem:[#allocation7 + $0xa0] sm:$0xff] }
 0x181   :  { %2080 = vmatpush1.bf16.msra.mxu1 %v2079_v51  ;;  %v842_v51 = vld [vmem:[#allocation5 + $0x3c0] sm:$0xff] }
 0x182   :  { %2082 = vmatprep.subr.bf16.mxu1 %v2081_v56  ;;  %v852_v56 = vld [vmem:[#allocation5 + $0x410] sm:$0xff] }
 0x183   :  { %v2101_v60 = vpack.c.bf16 %v852_v56, %v849_v55  ;;  %v1207_v55 = vld [vmem:[#allocation7 + $0x138] sm:$0xff] }
 0x1f7   :  { %v1537_v57 = vpop.f32.mrb[4].mxu1 }
 0x1f8   :  { %v1538_v58 = vpop.f32.mrb[5].mxu1 }
 0x1f9   :  { %v1539_v59 = vadd.f32 %v1538_v58, %v1537_v57  ;;  %v2099_v57 = vpack.c.bf16 %v845_v52, %v842_v51  ;;  %v2158_v58 = vpack.c.bf16 %v847_v54, %v844_v53  ;;  %v1173_v51 = vld [vmem:[#allocation7 + $0x28] sm:$0xff]  ;;  %v1190_v52 = vld [vmem:[#allocation7 + $0xb0] sm:$0xff]  ;;  %v1191_v53 = vld [vmem:[#allocation7 + $0xb8] sm:$0xff] }
 0x1fa   :  { %v1206_v54 = vld [vmem:[#allocation7 + $0x130] sm:$0xff] }
 0x1fb   :  { %v646_v5 = vadd.f32 %v1539_v59, %v433_v61  ;;  %v848_v59 = vld [vmem:[#allocation5 + $0x3f0] sm:$0xff]  ;;  %v851_v61 = vld [vmem:[#allocation5 + $0x408] sm:$0xff] }
 0x217   :  { %v574_v6 = vpop.f32.mrb[0].mxu0  ;;  %v715_v8 = vpop.f32.mrb[6].mxu1 }
 0x218   :  { %v2249_v10 = vadd.f32 %v574_v6, %v425_v62  ;;  %v2617_v11 = vadd.f32 %v715_v8, %v646_v5  ;;  %v576_v12 = vpop.f32.mrb[1].mxu0  ;;  %v1731_v13 = vpop.f32.mrb[7].mxu1  ;;  %v850_v62 = vld [vmem:[#allocation5 + $0x400] sm:$0xff]  ;;  %v855_v5 = vld [vmem:[#allocation5 + $0x428] sm:$0xff]  ;;  %v2103_v8 = vpack.c.bf16 %v851_v61, %v848_v59  ;;  %v1175_v59 = vld [vmem:[#allocation7 + $0x38] sm:$0xff] }
 0x219   :  { %v2250_v17 = vadd.f32 %v576_v12, %v429_v4  ;;  %v853_v4 = vld [vmem:[#allocation5 + $0x418] sm:$0xff]  ;;  %v858_v6 = vld [vmem:[#allocation5 + $0x440] sm:$0xff] }
 0x21a   :  { %v719_v23 = vmax.f32 %v2249_v10, 0.0  ;;  %v2161_v9 = vpack.c.bf16 %v853_v4, %v850_v62  ;;  %v854_v10 = vld [vmem:[#allocation5 + $0x420] sm:$0xff]  ;;  %v2105_v12 = vpack.c.bf16 %v858_v6, %v855_v5  ;;  %v857_v13 = vld [vmem:[#allocation5 + $0x438] sm:$0xff]  ;;  %v721_v26 = vmax.f32 %v2617_v11, 0.0  ;;  %v1193_v62 = vld [vmem:[#allocation7 + $0xc8] sm:$0xff] }
 0x21b   :  { %v720_v19 = vmax.f32 %v2250_v17, 0.0  ;;  %v864_v17 = vld [vmem:[#allocation5 + $0x470] sm:$0xff]  ;;  %v2107_v63 = vpack.c.bf16 %v857_v13, %v854_v10  ;;  %v2205_v11 = vpack.c.bf16 %v1203_v36, %v1202_v35  ;;  %v1192_v61 = vld [vmem:[#allocation7 + $0xc0] sm:$0xff]  ;;  %v1209_v5 = vld [vmem:[#allocation7 + $0x148] sm:$0xff] }
 0x21c   :  { %v1208_v4 = vld [vmem:[#allocation7 + $0x140] sm:$0xff]  ;;  %v1177_v10 = vld [vmem:[#allocation7 + $0x48] sm:$0xff]  ;;  %v1194_v13 = vld [vmem:[#allocation7 + $0xd0] sm:$0xff] }
 0x21d   :  { %947 = vmatprep.mubr.f32.mxu1 %v720_v19  ;;  %1089 = vmatprep.mubr.f32.mxu0 %v720_v19  ;;  %v860_v19 = vld [vmem:[#allocation5 + $0x450] sm:$0xff] }
 0x21e   :  { %948 = vmatmul.mubr.f32.vlgmr.msra.gmra.mrb[8].mxu1 %v719_v23  ;;  %1090 = vmatmul.mubr.f32.vlgmr.msra.gmra.mrb[2].mxu0 %v719_v23  ;;  %v865_v23 = vld [vmem:[#allocation5 + $0x478] sm:$0xff]  ;;  %v1182_v36 = vld [vmem:[#allocation7 + $0x70] sm:$0xff] }
 0x21f   :  { %2084 = vmatpush1.bf16.msra.mxu1 %v2083_v20  ;;  %2147 = vmatpush3.bf16.msra.mxu0 %v2146_v21  ;;  %v2109_v20 = vpack.c.bf16 %v864_v17, %v861_v16  ;;  %v863_v21 = vld [vmem:[#allocation5 + $0x468] sm:$0xff]  ;;  %v2167_v25 = vpack.c.bf16 %v865_v23, %v862_v22  ;;  %v1211_v16 = vld [vmem:[#allocation7 + $0x158] sm:$0xff]  ;;  %v1212_v23 = vld [vmem:[#allocation7 + $0x160] sm:$0xff] }
 0x220   :  { %2086 = vmatprep.subr.bf16.mxu1 %v2085_v24  ;;  %2148 = vmatprep.subr.bf16.mxu0 %v2372_v48  ;;  %v2111_v24 = vpack.c.bf16 %v863_v21, %v860_v19  ;;  %v1179_v19 = vld [vmem:[#allocation7 + $0x58] sm:$0xff]  ;;  %v1196_v21 = vld [vmem:[#allocation7 + $0xe0] sm:$0xff]  ;;  %v1197_v22 = vld [vmem:[#allocation7 + $0xe8] sm:$0xff] }
 0x221   :  { %1018 = vmatprep.mubr.f32.mxu1 %v2371_v0  ;;  %1764 = vmatprep.mubr.msk.f32.mxu0 %vm2373_vm1, %v2371_v0 }
 0x223   :  { %2088 = vmatpush1.bf16.msra.mxu1 %v2087_v29  ;;  %2150 = vmatpush3.bf16.msra.mxu0 %v2149_v30  ;;  %v2202_v29 = vpack.c.bf16 %v1201_v28, %v1200_v27  ;;  %v1185_v30 = vld [vmem:[#allocation7 + $0x88] sm:$0xff]  ;;  %v1180_v28 = vld [vmem:[#allocation7 + $0x60] sm:$0xff] }
 0x224   :  { %2090 = vmatprep.subr.bf16.mxu1 %v2089_v32  ;;  %2151 = vmatprep.subr.bf16.mxu0 %v2372_v48  ;;  %v1169_v32 = vld [vmem:[#allocation7 + $0x8] sm:$0xff]  ;;  %v2169_v33 = vpack.c.bf16 %v1185_v30, %v1184_v2  ;;  %v1214_v30 = vld [vmem:[#allocation7 + $0x170] sm:$0xff] }
 0x225   :  { %v2171_v34 = vpack.c.bf16 %v1169_v32, %v1168_v31  ;;  %v1181_v2 = vld [vmem:[#allocation7 + $0x68] sm:$0xff]  ;;  %v1215_v31 = vld [vmem:[#allocation7 + $0x178] sm:$0xff] }
 0x226   :  { %v2223_v32 = vpack.c.bf16 %v1215_v31, %v1214_v30 }
 0x227   :  { %2092 = vmatpush1.bf16.msra.mxu1 %v2091_v38  ;;  %2153 = vmatpush3.bf16.msra.mxu0 %v2152_v39  ;;  %v1187_v38 = vld [vmem:[#allocation7 + $0x98] sm:$0xff]  ;;  %v1170_v39 = vld [vmem:[#allocation7 + $0x10] sm:$0xff] }
 0x228   :  { %2094 = vmatprep.subr.bf16.mxu1 %v2093_v41  ;;  %2154 = vmatprep.subr.bf16.mxu0 %v2372_v48  ;;  %v2173_v41 = vpack.c.bf16 %v1187_v38, %v1186_v37  ;;  %v2175_v45 = vpack.c.bf16 %v1171_v40, %v1170_v39  ;;  %v1183_v37 = vld [vmem:[#allocation7 + $0x78] sm:$0xff]  ;;  %v1216_v38 = vld [vmem:[%s2729_s1] sm:$0x3]  ;;  %v2374_v39 = vmov 0  }
 0x229   :  { %2269 = vset.pattern.permute.xlu0 %v2374_v39 }
 0x22a   :  { %1220 = vperm.xlu0 %2269, %v1216_v38  }
 0x22b   :  { %2096 = vmatpush1.bf16.msra.mxu1 %v2095_v49  ;;  %2156 = vmatpush3.bf16.msra.mxu0 %v2155_v50  ;;  %v2177_v49 = vpack.c.bf16 %v1189_v47, %v1188_v44  ;;  %v1172_v50 = vld [vmem:[#allocation7 + $0x20] sm:$0xff] }
 0x22c   :  { %2098 = vmatprep.subr.bf16.mxu1 %v2097_v46  ;;  %2157 = vmatprep.subr.bf16.mxu0 %v2372_v48  ;;  %v2208_v46 = vpack.c.bf16 %v1205_v43, %v1204_v42  ;;  %v2179_v56 = vpack.c.bf16 %v1173_v51, %v1172_v50  ;;  %v866_v43 = vld [vmem:[%s2735_s7] sm:$0x7] }
 0x22d   :  { %v879_v44 = vrot.slane %v866_v43, %v2603_v7  ;;  %v875_v47 = vrot.slane %v866_v43, %v2589_v3 }
 0x22f   :  { %2100 = vmatpush1.bf16.msra.mxu1 %v2099_v57  ;;  %2159 = vmatpush3.bf16.msra.mxu0 %v2158_v58  ;;  %v2181_v57 = vpack.c.bf16 %v1191_v53, %v1190_v52  ;;  %v1174_v58 = vld [vmem:[#allocation7 + $0x30] sm:$0xff] }
 0x230   :  { %2102 = vmatprep.subr.bf16.mxu1 %v2101_v60  ;;  %2160 = vmatprep.subr.bf16.mxu0 %v2372_v48  ;;  %v2211_v60 = vpack.c.bf16 %v1207_v55, %v1206_v54  ;;  %v2183_v6 = vpack.c.bf16 %v1175_v59, %v1174_v58  ;;  %v1379_v55 = vld [vmem:[%s2739_s11] sm:$0xff]  ;;  %v1381_v59 = vld [vmem:[%s2739_s11 + $0x10] sm:$0xff] }
 0x233   :  { %2104 = vmatpush1.bf16.msra.mxu1 %v2103_v8  ;;  %2162 = vmatpush3.bf16.msra.mxu0 %v2161_v9  ;;  %v2185_v8 = vpack.c.bf16 %v1193_v62, %v1192_v61  ;;  %v1176_v9 = vld [vmem:[#allocation7 + $0x40] sm:$0xff] }
 0x234   :  { %2106 = vmatprep.subr.bf16.mxu1 %v2105_v12  ;;  %2163 = vmatprep.subr.bf16.mxu0 %v2372_v48  ;;  %v2214_v12 = vpack.c.bf16 %v1209_v5, %v1208_v4  ;;  %v2187_v17 = vpack.c.bf16 %v1177_v10, %v1176_v9  ;;  %v1383_v62 = vld [vmem:[%s2739_s11 + $0x20] sm:$0xff]  ;;  %v1384_v4 = vld [vmem:[%s2739_s11 + $0x28] sm:$0xff] }
 0x235   :  { %v2232_v5 = vpack.c.bf16 %v1384_v4, %v1383_v62  ;;  %v1387_v9 = vld [vmem:[%s2739_s11 + $0x40] sm:$0xff]  ;;  %v1388_v10 = vld [vmem:[%s2739_s11 + $0x48] sm:$0xff] }
 0x237   :  { %2108 = vmatpush1.bf16.msra.mxu1 %v2107_v63  ;;  %2165 = vmatpush3.bf16.msra.mxu0 %v2164_v18  ;;  %v2189_v63 = vpack.c.bf16 %v1195_v14, %v1194_v13  ;;  %v1178_v18 = vld [vmem:[#allocation7 + $0x50] sm:$0xff]  ;;  %v1390_v14 = vld [vmem:[%s2739_s11 + $0x58] sm:$0xff] }
 0x238   :  { %2110 = vmatprep.subr.bf16.mxu1 %v2109_v20  ;;  %2166 = vmatprep.subr.bf16.mxu0 %v2372_v48  ;;  %v2217_v20 = vpack.c.bf16 %v1211_v16, %v1210_v15  ;;  %v1389_v13 = vld [vmem:[%s2739_s11 + $0x50] sm:$0xff]  ;;  %v1391_v16 = vld [vmem:[%s2739_s11 + $0x60] sm:$0xff] }
 0x239   :  { %v2241_v15 = vpack.c.bf16 %v1390_v14, %v1389_v13 }
 0x23b   :  { %2112 = vmatpush1.bf16.msra.mxu1 %v2111_v24  ;;  %2168 = vmatpush3.bf16.msra.mxu0 %v2167_v25  ;;  %v1213_v24 = vld [vmem:[#allocation7 + $0x168] sm:$0xff]  ;;  %v2191_v25 = vpack.c.bf16 %v1179_v19, %v1178_v18  ;;  %v1393_v18 = vld [vmem:[%s2739_s11 + $0x70] sm:$0xff]  ;;  %v1394_v19 = vld [vmem:[%s2739_s11 + $0x78] sm:$0xff] }
 0x23c   :  { %2201 = vmatprep.subr.bf16.mxu1 %v2372_v48  ;;  %2170 = vmatprep.subr.bf16.mxu0 %v2169_v33  ;;  %v2220_v27 = vpack.c.bf16 %v1213_v24, %v1212_v23  ;;  %v1198_v33 = vld [vmem:[#allocation7 + $0xf0] sm:$0xff] }
 0x23e   :  { %1019 = vmatmul.mubr.f32.vlgmr.msra.gmra.mrb[8].mxu1 %v721_v26  ;;  %1765 = vmatmul.mubr.f32.vlgmr.msra.gmra.mrb[4].mxu0 %v721_v26  ;;  %v2193_v26 = vpack.c.bf16 %v1197_v22, %v1196_v21  ;;  %v1493_v21 = vld [vmem:[%s2737_s9] ss:$0 sm:$0xff]  ;;  %s2375_s9 = smov [#allocation8]  }
 0x23f   :  { %1799 = vmatprep.mubr.msk.f32.mxu1 %vm2373_vm1, %v2371_v0  ;;  %2203 = vmatpush3.bf16.msra.mxu1 %v2202_v29  ;;  %v2195_v29 = vpack.c.bf16 %v1181_v2, %v1180_v28  ;;  %v1494_v2 = vld [vmem:[%s2738_s10] ss:$0 sm:$0xff]  ;;  %s1481_s16 = sshll.u32 %s2375_s9, 4  ;;  %s1482_s16 = int_to_ptr.vmem [resolvable:$true] %s1481_s16 }
 0x240   :  { %2204 = vmatprep.subr.bf16.mxu1 %v2372_v48  ;;  %2172 = vmatpush3.bf16.msra.mxu0 %v2171_v34  ;;  %v1199_v34 = vld [vmem:[#allocation7 + $0xf8] sm:$0xff]  ;;  %s2336_s6 = scalar_lea.vmem %s1482_s16, 32  ;;  %p2341_p11 = scmp.lt.s32.totalorder %s1482_s16, %s1482_s16 }
 0x241   :  { %2174 = vmatprep.subr.bf16.mxu0 %v2173_v41  ;;  %v2197_v35 = vpack.c.bf16 %v1199_v34, %v1198_v33  ;;  %p2337_p10 = scmp.ne.s32.totalorder %s1482_s16, %s2336_s6  ;;  %p2342_p12 = scmp.lt.s32.totalorder %s2336_s6, %s2336_s6 }
 0x243   :  { %2206 = vmatpush3.bf16.msra.mxu1 %v2205_v11  ;;  %v2199_v11 = vpack.c.bf16 %v1183_v37, %v1182_v36  ;;  %p2343_p13 = por %p2342_p12, %p2341_p11 }
 0x244   :  { %2207 = vmatprep.subr.bf16.mxu1 %v2372_v48  ;;  %2176 = vmatpush3.bf16.msra.mxu0 %v2175_v45  ;;  %v871_v45 = vrot.slane %v866_v43, %v2581_v1 }
 0x245   :  { %2178 = vmatprep.subr.bf16.mxu0 %v2177_v49  ;;  %p2344_p0 = pnand %p2343_p13, %p2337_p10 }
 0x247   :  { %2209 = vmatpush3.bf16.msra.mxu1 %v2208_v46 }
 0x248   :  { %2210 = vmatprep.subr.bf16.mxu1 %v2372_v48  ;;  %2180 = vmatpush3.bf16.msra.mxu0 %v2179_v56  ;;  %v1380_v56 = vld [vmem:[%s2739_s11 + $0x8] sm:$0xff] }
 0x249   :  { %2182 = vmatprep.subr.bf16.mxu0 %v2181_v57  ;;  %v2226_v58 = vpack.c.bf16 %v1380_v56, %v1379_v55 }
 0x24b   :  { %2212 = vmatpush3.bf16.msra.mxu1 %v2211_v60  ;;  %v1382_v60 = vld [vmem:[%s2739_s11 + $0x18] sm:$0xff] }
 0x24c   :  { %2213 = vmatprep.subr.bf16.mxu1 %v2372_v48  ;;  %2184 = vmatpush3.bf16.msra.mxu0 %v2183_v6  ;;  %v2229_v61 = vpack.c.bf16 %v1382_v60, %v1381_v59  ;;  %v1385_v6 = vld [vmem:[%s2739_s11 + $0x30] sm:$0xff] }
 0x24d   :  { %2186 = vmatprep.subr.bf16.mxu0 %v2185_v8 }
 0x24f   :  { %2215 = vmatpush3.bf16.msra.mxu1 %v2214_v12  ;;  %v2238_v12 = vpack.c.bf16 %v1388_v10, %v1387_v9 }
 0x250   :  { %2216 = vmatprep.subr.bf16.mxu1 %v2372_v48  ;;  %2188 = vmatpush3.bf16.msra.mxu0 %v2187_v17  ;;  %v1392_v17 = vld [vmem:[%s2739_s11 + $0x68] sm:$0xff] }
 0x251   :  { %2190 = vmatprep.subr.bf16.mxu0 %v2189_v63  ;;  %v2244_v63 = vpack.c.bf16 %v1392_v17, %v1391_v16 }
 0x253   :  { %2218 = vmatpush3.bf16.msra.mxu1 %v2217_v20  ;;  %v2247_v20 = vpack.c.bf16 %v1394_v19, %v1393_v18 }
 0x254   :  { %2219 = vmatprep.subr.bf16.mxu1 %v2372_v48  ;;  %2192 = vmatpush3.bf16.msra.mxu0 %v2191_v25 }
 0x255   :  { %2194 = vmatprep.subr.bf16.mxu0 %v2193_v26 }
 0x257   :  { %2221 = vmatpush3.bf16.msra.mxu1 %v2220_v27 }
 0x258   :  { %2222 = vmatprep.subr.bf16.mxu1 %v2372_v48  ;;  %2196 = vmatpush3.bf16.msra.mxu0 %v2195_v29 }
 0x259   :  { %2198 = vmatprep.subr.bf16.mxu0 %v2197_v35 }
 0x25b   :  { %2224 = vmatpush3.bf16.msra.mxu1 %v2223_v32  ;;  %v1495_v32 = vld [vmem:[%s2740_s12] ss:$0 sm:$0xff] }
 0x25c   :  { %2200 = vmatpush3.bf16.msra.mxu0 %v2199_v11 }
 0x25d   :  { %2225 = vmatprep.subr.bf16.mxu0 %v2372_v48 }
 0x2a9   :  { %v1221_v22 = vpop.permute.xlu0 %1220 }
 0x2aa   :  { %v1229_v26 = vmul.f32 %v1493_v21, %v1221_v22 }
 0x2f1   :  { %v1589_v40 = vpop.f32.mrb[2].mxu0 }
 0x2f2   :  { %v1590_v41 = vpop.f32.mrb[3].mxu0 }
 0x2f3   :  { %v1591_v42 = vadd.f32 %v1590_v41, %v1589_v40 }
 0x2f5   :  { %v1092_v49 = vadd.f32 %v1591_v42, %v879_v44 }
 0x311   :  { %v1020_v50 = vpop.f32.mrb[8].mxu1  ;;  %v1161_v51 = vpop.f32.mrb[4].mxu0 }
 0x312   :  { %v2251_v46 = vadd.f32 %v1020_v50, %v871_v45  ;;  %v1162_v52 = vadd.f32 %v1161_v51, %v1092_v49  ;;  %v1022_v53 = vpop.f32.mrb[9].mxu1  ;;  %v1766_v54 = vpop.f32.mrb[5].mxu0 }
 0x313   :  { %v2252_v7 = vadd.f32 %v1022_v53, %v875_v47 }
 0x314   :  { %v1167_v57 = vmax.f32 %v1162_v52, 0.0  ;;  %v1165_v3 = vmax.f32 %v2251_v46, 0.0 }
 0x315   :  { %v1166_v1 = vmax.f32 %v2252_v7, 0.0 }
 0x316   :  { %1800 = vmatmul.mubr.f32.vlgmr.msra.gmra.mrb[10].mxu1 %v1167_v57 }
 0x317   :  { %1294 = vmatprep.mubr.f32.mxu0 %v1166_v1 }
 0x318   :  { %1295 = vmatmul.mubr.f32.vlgmr.msra.gmra.mrb[6].mxu0 %v1165_v3 }
 0x319   :  { %2227 = vmatpush3.bf16.msra.mxu0 %v2226_v58  ;;  %1834 = vmatprep.mubr.msk.f32.mxu0 %vm2373_vm1, %v2371_v0  ;;  %v1386_v0 = vld [vmem:[%s2739_s11 + $0x38] sm:$0xff] }
 0x31a   :  { %2228 = vmatprep.subr.bf16.mxu0 %v2372_v48  ;;  %v2235_v8 = vpack.c.bf16 %v1386_v0, %v1385_v6 }
 0x31d   :  { %2230 = vmatpush3.bf16.msra.mxu0 %v2229_v61 }
 0x31e   :  { %2231 = vmatprep.subr.bf16.mxu0 %v2372_v48 }
 0x321   :  { %2233 = vmatpush3.bf16.msra.mxu0 %v2232_v5 }
 0x322   :  { %2234 = vmatprep.subr.bf16.mxu0 %v2372_v48 }
 0x325   :  { %2236 = vmatpush3.bf16.msra.mxu0 %v2235_v8 }
 0x326   :  { %2237 = vmatprep.subr.bf16.mxu0 %v2372_v48 }
 0x329   :  { %2239 = vmatpush3.bf16.msra.mxu0 %v2238_v12 }
 0x32a   :  { %2240 = vmatprep.subr.bf16.mxu0 %v2372_v48 }
 0x32d   :  { %2242 = vmatpush3.bf16.msra.mxu0 %v2241_v15 }
 0x32e   :  { %2243 = vmatprep.subr.bf16.mxu0 %v2372_v48 }
 0x331   :  { %2245 = vmatpush3.bf16.msra.mxu0 %v2244_v63 }
 0x332   :  { %2246 = vmatprep.subr.bf16.mxu0 %v2372_v48 }
 0x335   :  { %2248 = vmatpush3.bf16.msra.mxu0 %v2247_v20 }
 0x3e9   :  { %v1366_v23 = vpop.f32.mrb[10].mxu1 }
 0x3ea   :  { %v1801_v24 = vpop.f32.mrb[11].mxu1 }
 0x3eb   :  { %v1641_v25 = vpop.f32.mrb[6].mxu0 }
 0x3ec   :  { %v1642_v48 = vpop.f32.mrb[7].mxu0 }
 0x3ed   :  { %v1643_v27 = vadd.f32 %v1642_v48, %v1641_v25 }
 0x3ef   :  { %v1297_v28 = vadd.f32 %v1643_v27, %v1229_v26 }
 0x3f1   :  { %v1367_v29 = vadd.f32 %v1366_v23, %v1297_v28 }
 0x3f3   :  { %v1377_v30 = vadd.f32 %v1494_v2, %v1367_v29 }
 0x3f5   :  { %v1378_v31 = vmax.f32 %v1377_v30, 0.0 }
 0x3f7   :  { %1835 = vmatmul.mubr.f32.vlgmr.msra.gmra.mrb[8].mxu0 %v1378_v31 }
 0x4ca   :  { %v1468_v33 = vpop.f32.mrb[8].mxu0 }
 0x4cb   :  { %v1469_v34 = vadd.f32 %v1495_v32, %v1468_v33  ;;  %v1836_v35 = vpop.f32.mrb[9].mxu0 }
 0x4cd   :  { %v1472_v36 = vmax.f32 %v1469_v34, 0.0 }
 0x4cf   :  { %1474 = vst.msk [vmem:[#allocation8] sm:$0x3] %vm1473_vm2, %v1472_v36 }
 0x4d0   :  { %2347 = shalt.err (!%p2344_p0)
}
 0x4d1   :  { %s2348_s12 = scalar_lea.hbm %s2741_s13, 32 }
 0x4d2   :  { %p2349_p1 = scmp.ne.s32.totalorder %s2741_s13, %s2348_s12  ;;  %p2352_p2 = scmp.lt.u32.totalorder %s2348_s12, %s2741_s13 }
 0x4d4   :  { %p2354_p3 = pnand %p2352_p2, %p2349_p1 }
 0x4d6   :  { %2357 = shalt.err (!%p2354_p3)
}
 0x4d7   :  { %1484 = dma.vmem_to_hbm [thread:$0]  %s1482_s16, 32, %s2741_s13, [#allocation4]  }
 0x4d8   :  { %2362 = dma.done.wait [#allocation4], 32  }
 0x4d9   :  { %2363 = vsyncadd [#allocation4], 4294967264 }
 0x4da   :  { %1488 = vsyncpa [#allocation3], 1 }
 0x4db   :  { %1489 = vsyncpa [#allocation6], 1 }
 0x4dc   :  { %1490 = vsyncpa [#allocation4], 1 }

</bundles_post_ra>
